<compile_context>
chip_gen: v5e
topology: v5e:2x2
jax: 0.10.0
libtpu: 0.0.40
codegen_flags: <defaults>
</compile_context>

<pallas_src>
import jax
import jax.numpy as jnp
from jax.experimental import pallas as pl
from jax.experimental.pallas import tpu as pltpu

# ----- small configuration consistent with the module's __init__ -----
SIGNAL_DIM = 8        # -> in_layer input dim = 2 * 8 = 16
INNER_DIM = 32        # L
N_FILTERS = 8         # C
N_LAYERS = 3
KERNEL_SIZE = 3
FR_SIZE = 64
BATCH = 4
EPS = 1e-5


# ---------------------------------------------------------------------------
# Pallas kernel: whole network fused (tiny shapes, everything fits VMEM).
# ---------------------------------------------------------------------------
def _make_psnet_kernel(b_real, b_pad, fr_pad):
    need_mask = (b_pad != b_real)
    f32 = jnp.float32
    bf16 = jnp.bfloat16

    def psnet_kernel(x_ref, w0_ref, wc1_ref, wc2_ref, p_ref, vec_ref,
                     wout_ref, o_ref):
        if need_mask:
            # zero padded batch rows after the affine+ReLU of layers 0/1 so
            # they never pollute the next layer's batch statistics.
            rows = jax.lax.broadcasted_iota(jnp.int32, (b_pad, 1), 0)
            row_mask = (rows < b_real).astype(f32)

        p_avg = p_ref[...]                 # (C*L, C*L) f32, block-diag * 1/(B*L)

        def bn_relu(z, gamma_f, beta_f, mask_rows):
            # BatchNorm1d (training mode): per-channel mean/var over (batch,len),
            # computed via one fused pooling matmul.
            s1 = jnp.sum(z, axis=0, keepdims=True)                   # (1, C*L)
            s2 = jnp.sum(z * z, axis=0, keepdims=True)               # (1, C*L)
            stats = jnp.concatenate([s1, s2], axis=0)                # (2, C*L)
            stats_f = jnp.dot(stats, p_avg,
                              preferred_element_type=f32)            # (2, C*L)
            m_f = stats_f[0:1, :]                                    # E[z]
            v_f = jnp.maximum(stats_f[1:2, :] - m_f * m_f, 0.0)      # biased var
            # Folded affine: out = max(z*scale + shift, 0)
            scale = gamma_f * jax.lax.rsqrt(v_f + EPS)
            shift = beta_f - m_f * scale
            out = jnp.maximum(z * scale + shift, 0.0)
            if need_mask and mask_rows:
                out = out * row_mask
            return out

        # layer 0 (in_layer folded into conv0): (Bp, 2*sd) @ (2*sd, C*L)
        z = jnp.dot(x_ref[...].astype(bf16), w0_ref[...],
                    preferred_element_type=f32)
        h = bn_relu(z, vec_ref[0:1, :], vec_ref[1:2, :], True)

        # layer 1: Conv1d as Toeplitz-block matmul (Bp, C*L) @ (C*L, C*L)
        z = jnp.dot(h.astype(bf16), wc1_ref[...], preferred_element_type=f32)
        h = bn_relu(z, vec_ref[2:3, :], vec_ref[3:4, :], True)

        # layer 2 (no row mask needed: padded rows are sliced off afterwards)
        z = jnp.dot(h.astype(bf16), wc2_ref[...], preferred_element_type=f32)
        h = bn_relu(z, vec_ref[4:5, :], vec_ref[5:6, :], False)

        # out_layer (Linear with bias, padded to 128 lanes -> unmasked store)
        o_ref[...] = (jnp.dot(h.astype(bf16), wout_ref[...],
                              preferred_element_type=f32)
                      + vec_ref[6:7, 0:fr_pad])

    return psnet_kernel


# ---------------------------------------------------------------------------
# One-time parameter glue (hoisted out of the per-call path).
# ---------------------------------------------------------------------------
def conv_to_toeplitz(w, L):
    """Conv1d weight (Cout, Cin, K), padding='same' -> (Cin*L, Cout*L) matrix M
    such that out_flat = x_flat @ M with flattened index f = c*L + l."""
    cout, cin, k = w.shape
    pad = k // 2
    ls = jnp.arange(L)
    m = jnp.zeros((cin, L, cout, L), dtype=jnp.float32)
    for kk in range(k):
        s = kk - pad
        # shift matrix S[l', l] = 1 iff l' == l + s  (zero-padded 'same' conv)
        S = (ls[:, None] == (ls[None, :] + s)).astype(jnp.float32)
        m = m + jnp.einsum('oc,ml->cmol', w[:, :, kk], S)
    return m.reshape(cin * L, cout * L)


def prepare_psnet_params(params, batch=BATCH):
    """Precompute all kernel-ready parameter tensors once.

    NOTE: the BN averaging matrix folds 1/(batch*L); `batch` here must match
    the batch size used at call time.
    """
    L, C = INNER_DIM, N_FILTERS
    f32, bf16 = jnp.float32, jnp.bfloat16

    # in_layer folded into conv0:  (2*sd, L) @ (L, C*L) -> (2*sd, C*L)
    win_t = params['w_in'].T.astype(f32)
    wc0 = conv_to_toeplitz(params['w_conv0'], L)
    w0 = (win_t @ wc0).astype(bf16)
    wc1 = conv_to_toeplitz(params['w_conv1'], L).astype(bf16)
    wc2 = conv_to_toeplitz(params['w_conv2'], L).astype(bf16)

    # fused BN pooling/averaging matrix (block-diagonal of 1/(batch*L))
    pool = jnp.repeat(jnp.eye(C, dtype=f32), L, axis=0)               # (C*L, C)
    p_avg = (pool @ pool.T) * (1.0 / float(batch * L))                # (C*L, C*L)

    # out_layer padded to a 128-lane multiple so the final store is unmasked;
    # the wrapper slices the real FR_SIZE columns back out.
    fr = FR_SIZE
    fr_pad = max(128, ((fr + 127) // 128) * 128)
    wout_t = params['w_out'].T.astype(f32)                            # (C*L, fr)
    wout_p = (jnp.zeros((C * L, fr_pad), f32)
              .at[:, :fr].set(wout_t)).astype(bf16)

    # Packed small vectors (one DMA): rows 0..5 = gamma/beta per layer
    # (channel-expanded to C*L), row 6 = out-layer bias (padded), row 7 = 0.
    vec = jnp.zeros((8, C * L), f32)
    for n in range(N_LAYERS):
        vec = vec.at[2 * n, :].set(jnp.repeat(params[f'gamma{n}'].astype(f32), L))
        vec = vec.at[2 * n + 1, :].set(jnp.repeat(params[f'beta{n}'].astype(f32), L))
    vec = vec.at[6, :fr].set(params['b_out'].astype(f32))

    prepared = (w0, wc1, wc2, p_avg, vec, wout_p)
    return jax.tree_util.tree_map(jax.device_put, prepared)


@jax.jit
def psnet_pallas(x, prepared):
    b = x.shape[0]
    b_pad = ((b + 7) // 8) * 8                       # full sublane tile
    x2d = x.reshape(b, -1).astype(jnp.float32)       # inp.view(bsz, -1)
    if b_pad != b:
        x2d = jnp.pad(x2d, ((0, b_pad - b), (0, 0)))
    fr_pad = prepared[-1].shape[1]

    kernel = _make_psnet_kernel(b, b_pad, fr_pad)
    vmem = pl.BlockSpec(memory_space=pltpu.MemorySpace.VMEM)
    out_p = pl.pallas_call(
        kernel,
        out_shape=jax.ShapeDtypeStruct((b_pad, fr_pad), jnp.float32),
        in_specs=[vmem] * (1 + len(prepared)),
        out_specs=vmem,
    )(x2d, *prepared)
    return out_p[:b, :FR_SIZE]


# ---------------------------------------------------------------------------
# Pure-JAX reference (direct port of the PyTorch forward) for validation.
# ---------------------------------------------------------------------------
def psnet_reference(x, params):
    b = x.shape[0]
    h = x.reshape(b, -1) @ params['w_in'].T                      # (B, L)
    a = h[:, None, :]                                            # (B, 1, L)
    for n in range(N_LAYERS):
        w = params[f'w_conv{n}']                                 # (Cout, Cin, K)
        k = w.shape[-1]
        pad = k // 2
        ap = jnp.pad(a, ((0, 0), (0, 0), (pad, pad)))
        out = jnp.zeros((b, w.shape[0], a.shape[-1]), jnp.float32)
        for kk in range(k):
            out = out + jnp.einsum('oc,bcl->bol', w[:, :, kk],
                                   ap[:, :, kk:kk + a.shape[-1]])
        mean = out.mean(axis=(0, 2), keepdims=True)
        var = out.var(axis=(0, 2), keepdims=True)                # biased
        g = params[f'gamma{n}'][None, :, None]
        be = params[f'beta{n}'][None, :, None]
        a = jnp.maximum(g * (out - mean) / jnp.sqrt(var + EPS) + be, 0.0)
    flat = a.reshape(b, -1)
    return flat @ params['w_out'].T + params['b_out']


# ---------------------------------------------------------------------------
def init_params(key):
    ks = jax.random.split(key, 12)
    p = {}
    fan_in = 2 * SIGNAL_DIM
    p['w_in'] = jax.random.normal(ks[0], (INNER_DIM, fan_in), jnp.float32) / jnp.sqrt(fan_in)
    for n in range(N_LAYERS):
        cin = 1 if n == 0 else N_FILTERS
        scale = 1.0 / jnp.sqrt(cin * KERNEL_SIZE)
        p[f'w_conv{n}'] = jax.random.normal(
            ks[1 + n], (N_FILTERS, cin, KERNEL_SIZE), jnp.float32) * scale
        p[f'gamma{n}'] = 1.0 + 0.1 * jax.random.normal(ks[4 + n], (N_FILTERS,), jnp.float32)
        p[f'beta{n}'] = 0.1 * jax.random.normal(ks[7 + n], (N_FILTERS,), jnp.float32)
    fo = INNER_DIM * N_FILTERS
    p['w_out'] = jax.random.normal(ks[10], (FR_SIZE, fo), jnp.float32) / jnp.sqrt(fo)
    p['b_out'] = 0.1 * jax.random.normal(ks[11], (FR_SIZE,), jnp.float32)
    return p


if __name__ == "__main__":
    key = jax.random.PRNGKey(0)
    pkey, xkey = jax.random.split(key)
    params = init_params(pkey)
    prepared = prepare_psnet_params(params, batch=BATCH)   # one-time glue

    # input like the PyTorch module expects: (bsz, 2, signal_dim)
    x = jax.random.normal(xkey, (BATCH, 2, SIGNAL_DIM), jnp.float32)

    out = psnet_pallas(x, prepared)
    out = jax.block_until_ready(out)

    ref = psnet_reference(x, params)
    assert out.shape == (BATCH, FR_SIZE)
    assert jnp.allclose(out, ref, atol=3e-2, rtol=3e-2), (
        float(jnp.max(jnp.abs(out - ref))))

    print("KERNEL_OK")
</pallas_src>

<mosaic_0001>
module attributes {stable_mosaic.version = 11 : i64} {
  func.func @psnet_kernel(%arg0: memref<8x16xf32, #tpu.memory_space<vmem>>, %arg1: memref<16x256xbf16, #tpu.memory_space<vmem>>, %arg2: memref<256x256xbf16, #tpu.memory_space<vmem>>, %arg3: memref<256x256xbf16, #tpu.memory_space<vmem>>, %arg4: memref<256x256xf32, #tpu.memory_space<vmem>>, %arg5: memref<8x256xf32, #tpu.memory_space<vmem>>, %arg6: memref<256x128xbf16, #tpu.memory_space<vmem>>, %arg7: memref<8x128xf32, #tpu.memory_space<vmem>>) attributes {dimension_semantics = [], scalar_prefetch = 0 : i64, scratch_operands = 0 : i64, tpu.core_type = #tpu.core_type<tc>} {
    %0 = tpu.iota {dimensions = array<i32: 0>} : vector<8x1xi32>
    %c4_i32 = arith.constant 4 : i32
    %1 = vector.broadcast %c4_i32 : i32 to vector<8x1xi32>
    %2 = arith.cmpi slt, %0, %1 : vector<8x1xi32>
    %3 = arith.extui %2 : vector<8x1xi1> to vector<8x1xi32>
    %4 = arith.sitofp %3 : vector<8x1xi32> to vector<8x1xf32>
    %c0 = arith.constant 0 : index
    %c0_0 = arith.constant 0 : index
    %5 = vector.load %arg4[%c0, %c0_0] : memref<256x256xf32, #tpu.memory_space<vmem>>, vector<256x256xf32>
    %c0_1 = arith.constant 0 : index
    %c0_2 = arith.constant 0 : index
    %6 = vector.load %arg0[%c0_1, %c0_2] : memref<8x16xf32, #tpu.memory_space<vmem>>, vector<8x16xf32>
    %7 = arith.truncf %6 : vector<8x16xf32> to vector<8x16xbf16>
    %c0_3 = arith.constant 0 : index
    %c0_4 = arith.constant 0 : index
    %8 = vector.load %arg1[%c0_3, %c0_4] : memref<16x256xbf16, #tpu.memory_space<vmem>>, vector<16x256xbf16>
    %cst = arith.constant dense<0.000000e+00> : vector<8x256xf32>
    %9 = tpu.matmul %7, %8, %cst {dimension_numbers = #tpu.dot_dimension_numbers<[1], [0], [0], [1], [0, 0, 1, 1], [], []>} : vector<8x16xbf16>, vector<16x256xbf16>, vector<8x256xf32> -> vector<8x256xf32>
    %c0_5 = arith.constant 0 : index
    %c0_6 = arith.constant 0 : index
    %10 = vector.load %arg5[%c0_5, %c0_6] : memref<8x256xf32, #tpu.memory_space<vmem>>, vector<1x256xf32>
    %c1 = arith.constant 1 : index
    %c0_7 = arith.constant 0 : index
    %11 = vector.load %arg5[%c1, %c0_7] : memref<8x256xf32, #tpu.memory_space<vmem>>, vector<1x256xf32>
    %cst_8 = arith.constant dense<0.000000e+00> : vector<256xf32>
    %12 = vector.multi_reduction <add>, %9, %cst_8 [0] : vector<8x256xf32> to vector<256xf32>
    %13 = vector.shape_cast %12 : vector<256xf32> to vector<1x256xf32>
    %14 = arith.mulf %9, %9 : vector<8x256xf32>
    %cst_9 = arith.constant dense<0.000000e+00> : vector<256xf32>
    %15 = vector.multi_reduction <add>, %14, %cst_9 [0] : vector<8x256xf32> to vector<256xf32>
    %16 = vector.shape_cast %15 : vector<256xf32> to vector<1x256xf32>
    %17 = tpu.concatenate %13, %16 in 0 : vector<1x256xf32>, vector<1x256xf32> -> vector<2x256xf32>
    %cst_10 = arith.constant dense<0.000000e+00> : vector<2x256xf32>
    %18 = tpu.matmul %17, %5, %cst_10 {dimension_numbers = #tpu.dot_dimension_numbers<[1], [0], [0], [1], [0, 0, 1, 1], [], []>} : vector<2x256xf32>, vector<256x256xf32>, vector<2x256xf32> -> vector<2x256xf32>
    %19 = vector.extract_strided_slice %18 {offsets = [0, 0], sizes = [1, 256], strides = [1, 1]} : vector<2x256xf32> to vector<1x256xf32>
    %20 = vector.extract_strided_slice %18 {offsets = [1, 0], sizes = [1, 256], strides = [1, 1]} : vector<2x256xf32> to vector<1x256xf32>
    %21 = arith.mulf %19, %19 : vector<1x256xf32>
    %22 = arith.subf %20, %21 : vector<1x256xf32>
    %cst_11 = arith.constant 0.000000e+00 : f32
    %23 = vector.broadcast %cst_11 : f32 to vector<1x256xf32>
    %24 = arith.maximumf %22, %23 : vector<1x256xf32>
    %cst_12 = arith.constant 9.99999974E-6 : f32
    %25 = vector.broadcast %cst_12 : f32 to vector<1x256xf32>
    %26 = arith.addf %24, %25 : vector<1x256xf32>
    %27 = math.rsqrt %26 : vector<1x256xf32>
    %28 = arith.mulf %10, %27 : vector<1x256xf32>
    %29 = arith.mulf %19, %28 : vector<1x256xf32>
    %30 = arith.subf %11, %29 : vector<1x256xf32>
    %31 = vector.broadcast %28 : vector<1x256xf32> to vector<8x256xf32>
    %32 = arith.mulf %9, %31 : vector<8x256xf32>
    %33 = vector.broadcast %30 : vector<1x256xf32> to vector<8x256xf32>
    %34 = arith.addf %32, %33 : vector<8x256xf32>
    %cst_13 = arith.constant 0.000000e+00 : f32
    %35 = vector.broadcast %cst_13 : f32 to vector<8x256xf32>
    %36 = arith.maximumf %34, %35 : vector<8x256xf32>
    %37 = vector.broadcast %4 : vector<8x1xf32> to vector<8x256xf32>
    %38 = arith.mulf %36, %37 : vector<8x256xf32>
    %39 = arith.truncf %38 : vector<8x256xf32> to vector<8x256xbf16>
    %c0_14 = arith.constant 0 : index
    %c0_15 = arith.constant 0 : index
    %40 = vector.load %arg2[%c0_14, %c0_15] : memref<256x256xbf16, #tpu.memory_space<vmem>>, vector<256x256xbf16>
    %cst_16 = arith.constant dense<0.000000e+00> : vector<8x256xf32>
    %41 = tpu.matmul %39, %40, %cst_16 {dimension_numbers = #tpu.dot_dimension_numbers<[1], [0], [0], [1], [0, 0, 1, 1], [], []>} : vector<8x256xbf16>, vector<256x256xbf16>, vector<8x256xf32> -> vector<8x256xf32>
    %c2 = arith.constant 2 : index
    %c0_17 = arith.constant 0 : index
    %42 = vector.load %arg5[%c2, %c0_17] : memref<8x256xf32, #tpu.memory_space<vmem>>, vector<1x256xf32>
    %c3 = arith.constant 3 : index
    %c0_18 = arith.constant 0 : index
    %43 = vector.load %arg5[%c3, %c0_18] : memref<8x256xf32, #tpu.memory_space<vmem>>, vector<1x256xf32>
    %cst_19 = arith.constant dense<0.000000e+00> : vector<256xf32>
    %44 = vector.multi_reduction <add>, %41, %cst_19 [0] : vector<8x256xf32> to vector<256xf32>
    %45 = vector.shape_cast %44 : vector<256xf32> to vector<1x256xf32>
    %46 = arith.mulf %41, %41 : vector<8x256xf32>
    %cst_20 = arith.constant dense<0.000000e+00> : vector<256xf32>
    %47 = vector.multi_reduction <add>, %46, %cst_20 [0] : vector<8x256xf32> to vector<256xf32>
    %48 = vector.shape_cast %47 : vector<256xf32> to vector<1x256xf32>
    %49 = tpu.concatenate %45, %48 in 0 : vector<1x256xf32>, vector<1x256xf32> -> vector<2x256xf32>
    %cst_21 = arith.constant dense<0.000000e+00> : vector<2x256xf32>
    %50 = tpu.matmul %49, %5, %cst_21 {dimension_numbers = #tpu.dot_dimension_numbers<[1], [0], [0], [1], [0, 0, 1, 1], [], []>} : vector<2x256xf32>, vector<256x256xf32>, vector<2x256xf32> -> vector<2x256xf32>
    %51 = vector.extract_strided_slice %50 {offsets = [0, 0], sizes = [1, 256], strides = [1, 1]} : vector<2x256xf32> to vector<1x256xf32>
    %52 = vector.extract_strided_slice %50 {offsets = [1, 0], sizes = [1, 256], strides = [1, 1]} : vector<2x256xf32> to vector<1x256xf32>
    %53 = arith.mulf %51, %51 : vector<1x256xf32>
    %54 = arith.subf %52, %53 : vector<1x256xf32>
    %cst_22 = arith.constant 0.000000e+00 : f32
    %55 = vector.broadcast %cst_22 : f32 to vector<1x256xf32>
    %56 = arith.maximumf %54, %55 : vector<1x256xf32>
    %cst_23 = arith.constant 9.99999974E-6 : f32
    %57 = vector.broadcast %cst_23 : f32 to vector<1x256xf32>
    %58 = arith.addf %56, %57 : vector<1x256xf32>
    %59 = math.rsqrt %58 : vector<1x256xf32>
    %60 = arith.mulf %42, %59 : vector<1x256xf32>
    %61 = arith.mulf %51, %60 : vector<1x256xf32>
    %62 = arith.subf %43, %61 : vector<1x256xf32>
    %63 = vector.broadcast %60 : vector<1x256xf32> to vector<8x256xf32>
    %64 = arith.mulf %41, %63 : vector<8x256xf32>
    %65 = vector.broadcast %62 : vector<1x256xf32> to vector<8x256xf32>
    %66 = arith.addf %64, %65 : vector<8x256xf32>
    %cst_24 = arith.constant 0.000000e+00 : f32
    %67 = vector.broadcast %cst_24 : f32 to vector<8x256xf32>
    %68 = arith.maximumf %66, %67 : vector<8x256xf32>
    %69 = vector.broadcast %4 : vector<8x1xf32> to vector<8x256xf32>
    %70 = arith.mulf %68, %69 : vector<8x256xf32>
    %71 = arith.truncf %70 : vector<8x256xf32> to vector<8x256xbf16>
    %c0_25 = arith.constant 0 : index
    %c0_26 = arith.constant 0 : index
    %72 = vector.load %arg3[%c0_25, %c0_26] : memref<256x256xbf16, #tpu.memory_space<vmem>>, vector<256x256xbf16>
    %cst_27 = arith.constant dense<0.000000e+00> : vector<8x256xf32>
    %73 = tpu.matmul %71, %72, %cst_27 {dimension_numbers = #tpu.dot_dimension_numbers<[1], [0], [0], [1], [0, 0, 1, 1], [], []>} : vector<8x256xbf16>, vector<256x256xbf16>, vector<8x256xf32> -> vector<8x256xf32>
    %c4 = arith.constant 4 : index
    %c0_28 = arith.constant 0 : index
    %74 = vector.load %arg5[%c4, %c0_28] : memref<8x256xf32, #tpu.memory_space<vmem>>, vector<1x256xf32>
    %c5 = arith.constant 5 : index
    %c0_29 = arith.constant 0 : index
    %75 = vector.load %arg5[%c5, %c0_29] : memref<8x256xf32, #tpu.memory_space<vmem>>, vector<1x256xf32>
    %cst_30 = arith.constant dense<0.000000e+00> : vector<256xf32>
    %76 = vector.multi_reduction <add>, %73, %cst_30 [0] : vector<8x256xf32> to vector<256xf32>
    %77 = vector.shape_cast %76 : vector<256xf32> to vector<1x256xf32>
    %78 = arith.mulf %73, %73 : vector<8x256xf32>
    %cst_31 = arith.constant dense<0.000000e+00> : vector<256xf32>
    %79 = vector.multi_reduction <add>, %78, %cst_31 [0] : vector<8x256xf32> to vector<256xf32>
    %80 = vector.shape_cast %79 : vector<256xf32> to vector<1x256xf32>
    %81 = tpu.concatenate %77, %80 in 0 : vector<1x256xf32>, vector<1x256xf32> -> vector<2x256xf32>
    %cst_32 = arith.constant dense<0.000000e+00> : vector<2x256xf32>
    %82 = tpu.matmul %81, %5, %cst_32 {dimension_numbers = #tpu.dot_dimension_numbers<[1], [0], [0], [1], [0, 0, 1, 1], [], []>} : vector<2x256xf32>, vector<256x256xf32>, vector<2x256xf32> -> vector<2x256xf32>
    %83 = vector.extract_strided_slice %82 {offsets = [0, 0], sizes = [1, 256], strides = [1, 1]} : vector<2x256xf32> to vector<1x256xf32>
    %84 = vector.extract_strided_slice %82 {offsets = [1, 0], sizes = [1, 256], strides = [1, 1]} : vector<2x256xf32> to vector<1x256xf32>
    %85 = arith.mulf %83, %83 : vector<1x256xf32>
    %86 = arith.subf %84, %85 : vector<1x256xf32>
    %cst_33 = arith.constant 0.000000e+00 : f32
    %87 = vector.broadcast %cst_33 : f32 to vector<1x256xf32>
    %88 = arith.maximumf %86, %87 : vector<1x256xf32>
    %cst_34 = arith.constant 9.99999974E-6 : f32
    %89 = vector.broadcast %cst_34 : f32 to vector<1x256xf32>
    %90 = arith.addf %88, %89 : vector<1x256xf32>
    %91 = math.rsqrt %90 : vector<1x256xf32>
    %92 = arith.mulf %74, %91 : vector<1x256xf32>
    %93 = arith.mulf %83, %92 : vector<1x256xf32>
    %94 = arith.subf %75, %93 : vector<1x256xf32>
    %95 = vector.broadcast %92 : vector<1x256xf32> to vector<8x256xf32>
    %96 = arith.mulf %73, %95 : vector<8x256xf32>
    %97 = vector.broadcast %94 : vector<1x256xf32> to vector<8x256xf32>
    %98 = arith.addf %96, %97 : vector<8x256xf32>
    %cst_35 = arith.constant 0.000000e+00 : f32
    %99 = vector.broadcast %cst_35 : f32 to vector<8x256xf32>
    %100 = arith.maximumf %98, %99 : vector<8x256xf32>
    %101 = arith.truncf %100 : vector<8x256xf32> to vector<8x256xbf16>
    %c0_36 = arith.constant 0 : index
    %c0_37 = arith.constant 0 : index
    %102 = vector.load %arg6[%c0_36, %c0_37] : memref<256x128xbf16, #tpu.memory_space<vmem>>, vector<256x128xbf16>
    %cst_38 = arith.constant dense<0.000000e+00> : vector<8x128xf32>
    %103 = tpu.matmul %101, %102, %cst_38 {dimension_numbers = #tpu.dot_dimension_numbers<[1], [0], [0], [1], [0, 0, 1, 1], [], []>} : vector<8x256xbf16>, vector<256x128xbf16>, vector<8x128xf32> -> vector<8x128xf32>
    %c6 = arith.constant 6 : index
    %c0_39 = arith.constant 0 : index
    %104 = vector.load %arg5[%c6, %c0_39] : memref<8x256xf32, #tpu.memory_space<vmem>>, vector<1x128xf32>
    %105 = vector.broadcast %104 : vector<1x128xf32> to vector<8x128xf32>
    %106 = arith.addf %103, %105 : vector<8x128xf32>
    %c0_40 = arith.constant 0 : index
    %c0_41 = arith.constant 0 : index
    %107 = vector.load %arg7[%c0_40, %c0_41] : memref<8x128xf32, #tpu.memory_space<vmem>>, vector<8x128xf32>
    tpu.vector_store %arg7[%c0_40, %c0_41], %106 {strides = array<i32>} : memref<8x128xf32, #tpu.memory_space<vmem>>, vector<8x128xf32>,
    return
  }
}

</mosaic_0001>

<bundles_post_ra>
// kernel: psnet_pallas.1
= control target key start
LH: loop header
LB: loop body
LE: loop exit
PB: predicated region body
PF: predicated region fallthrough
CT: control target
= control target key end

     0   :  { %12 = vsyncpa [#allocation3], 0  ;;  %s2517_s0 = inlined_call_operand.vmem [shape: f32[8,16], index: 0, kind: input, shape index: {}]   ;;  %s2518_s1 = inlined_call_operand.vmem [shape: bf16[16,256], index: 1, kind: input, shape index: {}]   ;;  %s2519_s2 = inlined_call_operand.hbm [shape: bf16[256,256], index: 2, kind: input, shape index: {}]   ;;  %s2520_s3 = inlined_call_operand.hbm [shape: bf16[256,256], index: 3, kind: input, shape index: {}]   ;;  %s2521_s4 = inlined_call_operand.hbm [shape: f32[256,256], index: 4, kind: input, shape index: {}]   ;;  %s2522_s5 = inlined_call_operand.hbm [shape: f32[8,256], index: 5, kind: input, shape index: {}]   ;;  %s2523_s6 = inlined_call_operand.hbm [shape: bf16[256,128], index: 6, kind: input, shape index: {}]   ;;  %s2524_s7 = inlined_call_operand.vmem [shape: f32[8,128], index: 7, kind: output, shape index: {}]  }
   0x1   :  { %13 = vsyncpa [#allocation5], 0 }
   0x2   :  { %14 = vsyncpa [#allocation8], 0  ;;  %s36_s26 = sshll.u32 %s2520_s3, 4  ;;  %s2038_s27 = smov [#allocation4]   ;;  %s37_s26 = int_to_ptr.hbm [resolvable:$true] %s36_s26 }
   0x3   :  { %s38_s28 = sshll.u32 %s2038_s27, 4  ;;  %s63_s8 = sshll.u32 %s2522_s5, 4  ;;  %s39_s28 = int_to_ptr.vmem [resolvable:$true] %s38_s28  ;;  %s64_s8 = int_to_ptr.hbm [resolvable:$true] %s63_s8 }
   0x4   :  { %s2039_s9 = smov 128   ;;  %s2040_s10 = smov 8  }
   0x5   :  { %44 = dma.hbm_to_vmem [thread:$0]  %s37_s26, 4096, %s39_s28, [#allocation5], %s2039_s9, %s2039_s9, %s2040_s10  }
   0x6   :  { %s2041_s11 = smov [#allocation7]   ;;  %s23_s15 = sshll.u32 %s2519_s2, 4  ;;  %s24_s15 = int_to_ptr.hbm [resolvable:$true] %s23_s15 }
   0x7   :  { %s65_s12 = sshll.u32 %s2041_s11, 4  ;;  %s49_s17 = sshll.u32 %s2521_s4, 4  ;;  %s66_s12 = int_to_ptr.vmem [resolvable:$true] %s65_s12  ;;  %s50_s17 = int_to_ptr.hbm [resolvable:$true] %s49_s17 }
   0x8   :  { %68 = dma.hbm_to_vmem [thread:$0]  %s64_s8, 256, %s66_s12, [#allocation8]  }
   0x9   :  { %s2042_s18 = smov [#allocation2]   ;;  %s2043_s5 = smov [#allocation6]  }
   0xa   :  { %s25_s19 = sshll.u32 %s2042_s18, 4  ;;  %s51_s20 = sshll.u32 %s2043_s5, 4  ;;  %s26_s19 = int_to_ptr.vmem [resolvable:$true] %s25_s19  ;;  %s52_s20 = int_to_ptr.vmem [resolvable:$true] %s51_s20 }
   0xb   :  { %31 = dma.hbm_to_vmem [thread:$0]  %s24_s15, 4096, %s26_s19, [#allocation3], %s2039_s9, %s2039_s9, %s2040_s10  }
   0xc   :  { %s2044_s21 = smov 256   ;;  %s2045_s22 = smov 16  }
   0xd   :  { %57 = dma.hbm_to_vmem [thread:$0]  %s50_s17, 8192, %s52_s20, [#allocation5], %s2044_s21, %s2044_s21, %s2045_s22  }
   0xe   :  { %s73_s24 = sshll.u32 %s2523_s6, 4  ;;  %s2046_s25 = smov [#allocation9]   ;;  %s74_s24 = int_to_ptr.hbm [resolvable:$true] %s73_s24 }
   0xf   :  { %s75_s26 = sshll.u32 %s2046_s25, 4  ;;  %s2047_s4 = smov 64   ;;  %s76_s26 = int_to_ptr.vmem [resolvable:$true] %s75_s26 }
  0x10   :  { %s2048_s27 = smov 4  }
  0x11   :  { %81 = dma.hbm_to_vmem [thread:$0]  %s74_s24, 2048, %s76_s26, [#allocation8], %s2047_s4, %s2047_s4, %s2048_s27  }
  0x12   :  { %2032 = dma.done.wait [#allocation3], 4096  }
  0x13   :  { %2033 = vsyncadd [#allocation3], 4294963200 }
  0x14   :  { %2034 = dma.done.wait [#allocation5], 12288  }
  0x15   :  { %2035 = vsyncadd [#allocation5], 4294955008 }
  0x16   :  { %2036 = dma.done.wait [#allocation8], 2304  }
  0x17   :  { %2037 = vsyncadd [#allocation8], 4294964992  ;;  %v1414_v0 = vld [vmem:[%s2518_s1] sm:$0xf]  ;;  %v1743_v1 = vld [vmem:[%s2518_s1 + $0x4] sm:$0xf0] }
  0x18   :  { %v1742_v2 = vld [vmem:[%s2518_s1 + $0x4] sm:$0xf]  ;;  %v1415_v3 = vor.u32 %v1743_v1, %v1414_v0  ;;  %v1416_v4 = vld [vmem:[%s2518_s1 + $0x8] sm:$0xf0]  ;;  %v2120_v6 = vld [vmem:[#allocation6 + $0xf0] sm:$0xff]  ;;  %vm186_vm0 = vcmask 130048  }
  0x19   :  { %v172_v5 = vld [vmem:[%s2517_s0] sm:$0xff]  ;;  %v1419_v7 = vor.u32 %v1742_v2, %v1416_v4  ;;  %248 = vmatpush.msra.mxu0 %v2120_v6  ;;  %v2123_v9 = vld [vmem:[#allocation6 + $0x1f0] sm:$0xff]  ;;  %v2125_v10 = vld [vmem:[#allocation6 + $0xe0] sm:$0xff]  ;;  %vm245_vm1 = vcmask 1040384  }
  0x1a   :  { %v173_v8 = vpack.c.bf16 %v172_v5, %v172_v5  ;;  %v2127_v11 = vld [vmem:[#allocation6 + $0x1e0] sm:$0xff]  ;;  %197 = vmatpush.bf16.msra.mxu2 %v1415_v3  ;;  %268 = vmatpush.msra.mxu1 %v2123_v9  ;;  %v2130_v12 = vld [vmem:[#allocation6 + $0xd0] sm:$0xff]  ;;  %v2213_v40 = vld [vmem:[#allocation6 + $0xf8] sm:$0xff] }
  0x1b   :  { %210 = vmatpush.bf16.msra.mxu3 %v1419_v7  ;;  %249 = vmatpush.msra.mxu0 %v2125_v10  ;;  %v2133_v13 = vld [vmem:[#allocation6 + $0x1d0] sm:$0xff]  ;;  %v2136_v14 = vld [vmem:[#allocation6 + $0xc0] sm:$0xff]  ;;  %v2216_v41 = vld [vmem:[#allocation6 + $0x1f8] sm:$0xff] }
  0x1c   :  { %269 = vmatpush.msra.mxu1 %v2127_v11  ;;  %v2139_v15 = vld [vmem:[#allocation6 + $0x1c0] sm:$0xff]  ;;  %v2142_v16 = vld [vmem:[#allocation6 + $0xb0] sm:$0xff]  ;;  %v2219_v42 = vld [vmem:[#allocation6 + $0xe8] sm:$0xff] }
  0x1d   :  { %1420 = vmatmul.msk.bf16.vlgmr.msra.gmra.mxu2 %vm186_vm0, %v173_v8  ;;  %250 = vmatpush.msra.mxu0 %v2130_v12  ;;  %v2145_v17 = vld [vmem:[#allocation6 + $0x1b0] sm:$0xff]  ;;  %v2148_v18 = vld [vmem:[#allocation6 + $0xa0] sm:$0xff]  ;;  %v2223_v43 = vld [vmem:[#allocation6 + $0x1e8] sm:$0xff] }
  0x1e   :  { %1421 = vmatmul.msk.bf16.vlgmr.msra.gmra.mxu3 %vm186_vm0, %v173_v8  ;;  %270 = vmatpush.msra.mxu1 %v2133_v13  ;;  %v2151_v19 = vld [vmem:[#allocation6 + $0x1a0] sm:$0xff]  ;;  %v2154_v20 = vld [vmem:[#allocation6 + $0x90] sm:$0xff]  ;;  %v2226_v44 = vld [vmem:[#allocation6 + $0xd8] sm:$0xff] }
  0x1f   :  { %251 = vmatpush.msra.mxu0 %v2136_v14  ;;  %v2157_v21 = vld [vmem:[#allocation6 + $0x190] sm:$0xff]  ;;  %v2160_v22 = vld [vmem:[#allocation6 + $0x80] sm:$0xff]  ;;  %v2229_v45 = vld [vmem:[#allocation6 + $0x1d8] sm:$0xff] }
  0x20   :  { %271 = vmatpush.msra.mxu1 %v2139_v15  ;;  %v2163_v23 = vld [vmem:[#allocation6 + $0x180] sm:$0xff]  ;;  %v2166_v24 = vld [vmem:[#allocation6 + $0x70] sm:$0xff]  ;;  %v2232_v46 = vld [vmem:[#allocation6 + $0xc8] sm:$0xff] }
  0x21   :  { %252 = vmatpush.msra.mxu0 %v2142_v16  ;;  %v2169_v25 = vld [vmem:[#allocation6 + $0x170] sm:$0xff]  ;;  %v2172_v26 = vld [vmem:[#allocation6 + $0x60] sm:$0xff]  ;;  %v2235_v47 = vld [vmem:[#allocation6 + $0x1c8] sm:$0xff] }
  0x22   :  { %272 = vmatpush.msra.mxu1 %v2145_v17  ;;  %2555 = vst [vmem:[#allocation13_spill] sm:$0xff] %v2172_v26  ;;  %v2175_v27 = vld [vmem:[#allocation6 + $0x160] sm:$0xff]  ;;  %v2178_v28 = vld [vmem:[#allocation6 + $0x50] sm:$0xff]  ;;  %v2240_v48 = vld [vmem:[#allocation6 + $0xb8] sm:$0xff] }
  0x23   :  { %253 = vmatpush.msra.mxu0 %v2148_v18  ;;  %2556 = vst [vmem:[#allocation14_spill] sm:$0xff] %v2175_v27  ;;  %v2181_v29 = vld [vmem:[#allocation6 + $0x150] sm:$0xff]  ;;  %v2184_v30 = vld [vmem:[#allocation6 + $0x40] sm:$0xff]  ;;  %v2242_v49 = vld [vmem:[#allocation6 + $0x1b8] sm:$0xff] }
  0x24   :  { %273 = vmatpush.msra.mxu1 %v2151_v19  ;;  %2557 = vst [vmem:[#allocation15_spill] sm:$0xff] %v2178_v28  ;;  %v2187_v31 = vld [vmem:[#allocation6 + $0x140] sm:$0xff]  ;;  %v2190_v32 = vld [vmem:[#allocation6 + $0x30] sm:$0xff]  ;;  %v2246_v50 = vld [vmem:[#allocation6 + $0xa8] sm:$0xff] }
  0x25   :  { %254 = vmatpush.msra.mxu0 %v2154_v20  ;;  %2558 = vst [vmem:[#allocation16_spill] sm:$0xff] %v2181_v29  ;;  %v2193_v33 = vld [vmem:[#allocation6 + $0x130] sm:$0xff]  ;;  %v2196_v34 = vld [vmem:[#allocation6 + $0x20] sm:$0xff]  ;;  %v2248_v51 = vld [vmem:[#allocation6 + $0x1a8] sm:$0xff] }
  0x26   :  { %274 = vmatpush.msra.mxu1 %v2157_v21  ;;  %2559 = vst [vmem:[#allocation17_spill] sm:$0xff] %v2184_v30  ;;  %v2199_v35 = vld [vmem:[#allocation6 + $0x120] sm:$0xff]  ;;  %v2202_v36 = vld [vmem:[#allocation6 + $0x10] sm:$0xff]  ;;  %v2252_v52 = vld [vmem:[#allocation6 + $0x98] sm:$0xff] }
  0x27   :  { %255 = vmatpush.msra.mxu0 %v2160_v22  ;;  %2560 = vst [vmem:[#allocation18_spill] sm:$0xff] %v2187_v31  ;;  %v2205_v37 = vld [vmem:[#allocation6 + $0x110] sm:$0xff]  ;;  %v2208_v38 = vld [vmem:[#allocation6] sm:$0xff]  ;;  %v2254_v53 = vld [vmem:[#allocation6 + $0x198] sm:$0xff] }
  0x28   :  { %275 = vmatpush.msra.mxu1 %v2163_v23  ;;  %2561 = vst [vmem:[#allocation19_spill] sm:$0xff] %v2190_v32  ;;  %v2211_v39 = vld [vmem:[#allocation6 + $0x100] sm:$0xff]  ;;  %v2258_v54 = vld [vmem:[#allocation6 + $0x88] sm:$0xff]  ;;  %v2264_v56 = vld [vmem:[#allocation6 + $0x78] sm:$0xff] }
  0x29   :  { %256 = vmatpush.msra.mxu0 %v2166_v24  ;;  %2562 = vst [vmem:[#allocation20_spill] sm:$0xff] %v2193_v33  ;;  %v2260_v55 = vld [vmem:[#allocation6 + $0x188] sm:$0xff]  ;;  %v2266_v57 = vld [vmem:[#allocation6 + $0x178] sm:$0xff] }
  0x2a   :  { %276 = vmatpush.msra.mxu1 %v2169_v25  ;;  %2563 = vst [vmem:[#allocation21_spill] sm:$0xff] %v2196_v34  ;;  %v2268_v58 = vld [vmem:[#allocation6 + $0x68] sm:$0xff]  ;;  %v2274_v60 = vld [vmem:[#allocation6 + $0x58] sm:$0xff] }
  0x2b   :  { %257 = vmatpush.msra.mxu0 %v2172_v26  ;;  %2564 = vst [vmem:[#allocation22_spill] sm:$0xff] %v2199_v35  ;;  %v2272_v59 = vld [vmem:[#allocation6 + $0x168] sm:$0xff]  ;;  %v2276_v61 = vld [vmem:[#allocation6 + $0x158] sm:$0xff] }
  0x2c   :  { %277 = vmatpush.msra.mxu1 %v2175_v27  ;;  %2565 = vst [vmem:[#allocation23_spill] sm:$0xff] %v2202_v36  ;;  %v2280_v62 = vld [vmem:[#allocation6 + $0x48] sm:$0xff]  ;;  %v2288_v0 = vld [vmem:[#allocation6 + $0x38] sm:$0xff] }
  0x2d   :  { %258 = vmatpush.msra.mxu0 %v2178_v28  ;;  %2566 = vst [vmem:[#allocation24_spill] sm:$0xff] %v2205_v37  ;;  %v2282_v63 = vld [vmem:[#allocation6 + $0x148] sm:$0xff]  ;;  %v2290_v1 = vld [vmem:[#allocation6 + $0x138] sm:$0xff] }
  0x2e   :  { %278 = vmatpush.msra.mxu1 %v2181_v29  ;;  %2567 = vst [vmem:[#allocation25_spill] sm:$0xff] %v2208_v38  ;;  %v2292_v2 = vld [vmem:[#allocation6 + $0x28] sm:$0xff]  ;;  %v2298_v4 = vld [vmem:[#allocation6 + $0x18] sm:$0xff] }
  0x2f   :  { %259 = vmatpush.msra.mxu0 %v2184_v30  ;;  %2568 = vst [vmem:[#allocation26_spill] sm:$0xff] %v2211_v39  ;;  %v2296_v3 = vld [vmem:[#allocation6 + $0x128] sm:$0xff]  ;;  %v2300_v5 = vld [vmem:[#allocation6 + $0x118] sm:$0xff] }
  0x30   :  { %279 = vmatpush.msra.mxu1 %v2187_v31  ;;  %2569 = vst [vmem:[#allocation27_spill] sm:$0xff] %v2268_v58  ;;  %v2304_v7 = vld [vmem:[#allocation6 + $0x8] sm:$0xff] }
  0x31   :  { %260 = vmatpush.msra.mxu0 %v2190_v32  ;;  %2570 = vst [vmem:[#allocation28_spill] sm:$0xff] %v2272_v59  ;;  %v2306_v8 = vld [vmem:[#allocation6 + $0x108] sm:$0xff] }
  0x32   :  { %280 = vmatpush.msra.mxu1 %v2193_v33  ;;  %2571 = vst [vmem:[#allocation29_spill] sm:$0xff] %v2274_v60  ;;  %v1506_v26 = vld [vmem:[#allocation2 + $0xa8] sm:$0xf0] }
  0x33   :  { %261 = vmatpush.msra.mxu0 %v2196_v34  ;;  %2572 = vst [vmem:[#allocation30_spill] sm:$0xff] %v2276_v61 }
  0x34   :  { %281 = vmatpush.msra.mxu1 %v2199_v35  ;;  %2573 = vst [vmem:[#allocation31_spill] sm:$0xff] %v2280_v62 }
  0x35   :  { %262 = vmatpush.msra.mxu0 %v2202_v36  ;;  %2574 = vst [vmem:[#allocation32_spill] sm:$0xff] %v2282_v63 }
  0x36   :  { %282 = vmatpush.msra.mxu1 %v2205_v37  ;;  %2575 = vst [vmem:[#allocation33_spill] sm:$0xff] %v2288_v0 }
  0x37   :  { %263 = vmatpush.msra.mxu0 %v2208_v38  ;;  %2576 = vst [vmem:[#allocation34_spill] sm:$0xff] %v2290_v1 }
  0x38   :  { %283 = vmatpush.msra.mxu1 %v2211_v39  ;;  %2577 = vst [vmem:[#allocation35_spill] sm:$0xff] %v2292_v2 }
  0x39   :  { %288 = vmatpush.msrb.mxu0 %v2213_v40  ;;  %2578 = vst [vmem:[#allocation36_spill] sm:$0xff] %v2296_v3 }
  0x3a   :  { %308 = vmatpush.msrb.mxu1 %v2216_v41  ;;  %2579 = vst [vmem:[#allocation37_spill] sm:$0xff] %v2298_v4 }
  0x3b   :  { %289 = vmatpush.msrb.mxu0 %v2219_v42  ;;  %2580 = vst [vmem:[#allocation38_spill] sm:$0xff] %v2300_v5 }
  0x3c   :  { %309 = vmatpush.msrb.mxu1 %v2223_v43  ;;  %2581 = vst [vmem:[#allocation39_spill] sm:$0xff] %v2304_v7 }
  0x3d   :  { %290 = vmatpush.msrb.mxu0 %v2226_v44  ;;  %2582 = vst [vmem:[#allocation40_spill] sm:$0xff] %v2306_v8 }
  0x3e   :  { %310 = vmatpush.msrb.mxu1 %v2229_v45 }
  0x3f   :  { %291 = vmatpush.msrb.mxu0 %v2232_v46 }
  0x40   :  { %311 = vmatpush.msrb.mxu1 %v2235_v47 }
  0x41   :  { %292 = vmatpush.msrb.mxu0 %v2240_v48 }
  0x42   :  { %312 = vmatpush.msrb.mxu1 %v2242_v49 }
  0x43   :  { %293 = vmatpush.msrb.mxu0 %v2246_v50 }
  0x44   :  { %313 = vmatpush.msrb.mxu1 %v2248_v51 }
  0x45   :  { %294 = vmatpush.msrb.mxu0 %v2252_v52 }
  0x46   :  { %314 = vmatpush.msrb.mxu1 %v2254_v53 }
  0x47   :  { %295 = vmatpush.msrb.mxu0 %v2258_v54 }
  0x48   :  { %315 = vmatpush.msrb.mxu1 %v2260_v55 }
  0x49   :  { %296 = vmatpush.msrb.mxu0 %v2264_v56 }
  0x4a   :  { %316 = vmatpush.msrb.mxu1 %v2266_v57 }
  0x4b   :  { %297 = vmatpush.msrb.mxu0 %v2268_v58 }
  0x4c   :  { %317 = vmatpush.msrb.mxu1 %v2272_v59 }
  0x4d   :  { %298 = vmatpush.msrb.mxu0 %v2274_v60 }
  0x4e   :  { %318 = vmatpush.msrb.mxu1 %v2276_v61 }
  0x4f   :  { %299 = vmatpush.msrb.mxu0 %v2280_v62 }
  0x50   :  { %319 = vmatpush.msrb.mxu1 %v2282_v63 }
  0x51   :  { %300 = vmatpush.msrb.mxu0 %v2288_v0 }
  0x52   :  { %320 = vmatpush.msrb.mxu1 %v2290_v1 }
  0x53   :  { %301 = vmatpush.msrb.mxu0 %v2292_v2 }
  0x54   :  { %321 = vmatpush.msrb.mxu1 %v2296_v3 }
  0x55   :  { %302 = vmatpush.msrb.mxu0 %v2298_v4 }
  0x56   :  { %322 = vmatpush.msrb.mxu1 %v2300_v5 }
  0x57   :  { %303 = vmatpush.msrb.mxu0 %v2304_v7 }
  0x58   :  { %323 = vmatpush.msrb.mxu1 %v2306_v8 }
  0xa0   :  { %v2312_v38 = vpop.f32.mrf.mxu2 }
  0xa1   :  { %2583 = vst [vmem:[#allocation41_spill] sm:$0xff] %v2312_v38  ;;  %v219_v39 = vrot.slane %v2312_v38, 4  ;;  %v231_v36 = vmul.f32 %v2312_v38, %v2312_v38  ;;  %v2317_v37 = vpop.f32.mrf.mxu3 }
  0xa2   :  { %2584 = vst [vmem:[#allocation42_spill] sm:$0xff] %v2317_v37  ;;  %v225_v2 = vrot.slane %v2317_v37, 4  ;;  %v232_v4 = vmul.f32 %v2317_v37, %v2317_v37 }
  0xa3   :  { %v220_v5 = vadd.f32 %v219_v39, %v2312_v38  ;;  %v233_v3 = vrot.slane %v231_v36, 4 }
  0xa4   :  { %v226_v7 = vadd.f32 %v225_v2, %v2317_v37  ;;  %v239_v8 = vrot.slane %v232_v4, 4 }
  0xa5   :  { %v221_v34 = vrot.slane %v220_v5, 2  ;;  %v234_v35 = vadd.f32 %v233_v3, %v231_v36  ;;  %v1472_v3 = vld [vmem:[#allocation2 + $0x60] sm:$0xf] }
  0xa6   :  { %v227_v0 = vrot.slane %v226_v7, 2  ;;  %v240_v1 = vadd.f32 %v239_v8, %v232_v4  ;;  %v1757_v4 = vld [vmem:[#allocation2 + $0x64] sm:$0xf0] }
  0xa7   :  { %v222_v32 = vadd.f32 %v221_v34, %v220_v5  ;;  %v235_v33 = vrot.slane %v234_v35, 2  ;;  %v1536_v5 = vld [vmem:[#allocation2 + $0xe0] sm:$0xf] }
  0xa8   :  { %v201_v62 = vpop.f32.mrf.mxu2  ;;  %v228_v63 = vadd.f32 %v227_v0, %v226_v7  ;;  %v241_v30 = vrot.slane %v240_v1, 2  ;;  %v1544_v0 = vld [vmem:[#allocation2 + $0xf0] sm:$0xf] }
  0xa9   :  { %v214_v31 = vpop.f32.mrf.mxu3  ;;  %v223_v60 = vrot.slane %v222_v32, 1  ;;  %v236_v61 = vadd.f32 %v235_v33, %v234_v35  ;;  %v1759_v35 = vld [vmem:[#allocation2 + $0x74] sm:$0xf0] }
  0xaa   :  { %v229_v28 = vrot.slane %v228_v63, 1  ;;  %v242_v29 = vadd.f32 %v241_v30, %v240_v1  ;;  %v1480_v30 = vld [vmem:[#allocation2 + $0x70] sm:$0xf] }
  0xab   :  { %v237_v58 = vrot.slane %v236_v61, 1  ;;  %v224_v38 = vadd.f32 %v223_v60, %v222_v32 }
  0xac   :  { %v243_v39 = vrot.slane %v242_v29, 1  ;;  %v230_v37 = vadd.f32 %v229_v28, %v228_v63  ;;  %v1481_v28 = vor.u32 %v1759_v35, %v1480_v30  ;;  %v1772_v35 = vld [vmem:[#allocation2 + $0xe4] sm:$0xf] }
  0xad   :  { %v238_v2 = vadd.f32 %v237_v58, %v236_v61  ;;  %v1758_v58 = vld [vmem:[#allocation2 + $0x74] sm:$0xf] }
  0xae   :  { %v244_v59 = vadd.f32 %v243_v39, %v242_v29  ;;  %v1775_v29 = vld [vmem:[#allocation2 + $0xf4] sm:$0xf0]  ;;  %590 = vmatpush.bf16.msrb.mxu2 %v1481_v28  ;;  %v1473_v39 = vor.u32 %v1757_v4, %v1472_v3  ;;  %v1466_v4 = vld [vmem:[#allocation2 + $0x58] sm:$0xf0] }
  0xaf   :  { %v246_v36 = vsel %vm245_vm1, %v224_v38, %v238_v2  ;;  %v1482_v38 = vld [vmem:[#allocation2 + $0x78] sm:$0xf0]  ;;  %v1545_v60 = vor.u32 %v1775_v29, %v1544_v0  ;;  %v1773_v2 = vld [vmem:[#allocation2 + $0xe4] sm:$0xf0]  ;;  %v1538_v0 = vld [vmem:[#allocation2 + $0xe8] sm:$0xf0] }
  0xb0   :  { %264 = vmatmul.f32.vlgmr.msra.gmra.mxu0 %v246_v36  ;;  %v247_v34 = vsel %vm245_vm1, %v230_v37, %v244_v59  ;;  %v1485_v61 = vor.u32 %v1758_v58, %v1482_v38  ;;  %v1774_v37 = vld [vmem:[#allocation2 + $0xf4] sm:$0xf]  ;;  %v1546_v59 = vld [vmem:[#allocation2 + $0xf8] sm:$0xf0]  ;;  %v1541_v29 = vor.u32 %v1772_v35, %v1538_v0  ;;  %v1464_v58 = vld [vmem:[#allocation2 + $0x50] sm:$0xf] }
  0xb1   :  { %284 = vmatmul.f32.vlgmr.msra.gmra.mxu1 %v247_v34  ;;  %v1549_v1 = vor.u32 %v1774_v37, %v1546_v59  ;;  %603 = vmatpush.bf16.msrb.mxu3 %v1545_v60  ;;  %v1755_v38 = vld [vmem:[#allocation2 + $0x54] sm:$0xf0]  ;;  %v1528_v60 = vld [vmem:[#allocation2 + $0xd0] sm:$0xf]  ;;  %v1769_v35 = vld [vmem:[#allocation2 + $0xc4] sm:$0xf0] }
  0xb2   :  { %616 = vmatpush.bf16.msra.mxu0 %v1485_v61  ;;  %591 = vmatpush.bf16.msrb.mxu2 %v1473_v39  ;;  %v1465_v59 = vor.u32 %v1755_v38, %v1464_v58  ;;  %v1752_v0 = vld [vmem:[#allocation2 + $0x44] sm:$0xf] }
  0xb3   :  { %629 = vmatpush.bf16.msra.mxu1 %v1549_v1  ;;  %v1754_v1 = vld [vmem:[#allocation2 + $0x54] sm:$0xf]  ;;  %v1768_v38 = vld [vmem:[#allocation2 + $0xc4] sm:$0xf] }
  0xb4   :  { %v1469_v39 = vor.u32 %v1754_v1, %v1466_v4  ;;  %v1751_v1 = vld [vmem:[#allocation2 + $0x34] sm:$0xf0] }
  0xb6   :  { %592 = vmatpush.bf16.msrb.mxu2 %v1465_v59 }
  0xb7   :  { %630 = vmatpush.bf16.msra.mxu1 %v1541_v29 }
  0xb8   :  { %304 = vmatmul.f32.vlgmr.msrb.gmra.mxu0 %v246_v36  ;;  %v1756_v36 = vld [vmem:[#allocation2 + $0x64] sm:$0xf] }
  0xb9   :  { %324 = vmatmul.f32.vlgmr.msrb.gmra.mxu1 %v247_v34  ;;  %v1474_v34 = vld [vmem:[#allocation2 + $0x68] sm:$0xf0] }
  0xba   :  { %v1477_v30 = vor.u32 %v1756_v36, %v1474_v34  ;;  %v1456_v36 = vld [vmem:[#allocation2 + $0x40] sm:$0xf]  ;;  %v1753_v34 = vld [vmem:[#allocation2 + $0x44] sm:$0xf0] }
  0xbc   :  { %617 = vmatpush.bf16.msra.mxu0 %v1477_v30  ;;  %v1457_v30 = vor.u32 %v1753_v34, %v1456_v36  ;;  %v1450_v34 = vld [vmem:[#allocation2 + $0x38] sm:$0xf0] }
  0xbe   :  { %593 = vmatpush.bf16.msrb.mxu2 %v1457_v30 }
  0xc0   :  { %618 = vmatpush.bf16.msra.mxu0 %v1469_v39  ;;  %v1750_v39 = vld [vmem:[#allocation2 + $0x34] sm:$0xf] }
  0xc1   :  { %v1453_v30 = vor.u32 %v1750_v39, %v1450_v34  ;;  %v1432_v39 = vld [vmem:[#allocation2 + $0x10] sm:$0xf]  ;;  %v1747_v34 = vld [vmem:[#allocation2 + $0x14] sm:$0xf0] }
 0x12d   :  { %v265_v31 = vpop.f32.mrf.mxu0 }
 0x12e   :  { %v285_v62 = vpop.f32.mrf.mxu1 }
 0x12f   :  { %v2326_v33 = vadd.f32 %v285_v62, %v265_v31  ;;  %v1537_v62 = vor.u32 %v1773_v2, %v1536_v5  ;;  %v1770_v5 = vld [vmem:[#allocation2 + $0xd4] sm:$0xf] }
 0x131   :  { %v328_v32 = vmul.f32 %v2326_v33, %v2326_v33  ;;  %604 = vmatpush.bf16.msrb.mxu3 %v1537_v62 }
 0x133   :  { %v332_v63 = vrot.slane %v328_v32, 7 }
 0x135   :  { %v336_v7 = vsub.f32 %v2326_v33, %v332_v63  ;;  %v305_v8 = vpop.f32.mrf.mxu0  ;;  %v1771_v63 = vld [vmem:[#allocation2 + $0xd4] sm:$0xf0] }
 0x136   :  { %v325_v31 = vpop.f32.mrf.mxu1  ;;  %v1529_v3 = vor.u32 %v1771_v63, %v1528_v60  ;;  %v1522_v60 = vld [vmem:[#allocation2 + $0xc8] sm:$0xf0]  ;;  %v1448_v63 = vld [vmem:[#allocation2 + $0x30] sm:$0xf] }
 0x137   :  { %v338_v32 = vmax.f32 %v336_v7, 0.0  ;;  %v2331_v28 = vadd.f32 %v325_v31, %v305_v8  ;;  %v1530_v7 = vld [vmem:[#allocation2 + $0xd8] sm:$0xf0]  ;;  %v1520_v31 = vld [vmem:[#allocation2 + $0xc0] sm:$0xf]  ;;  %v1525_v59 = vor.u32 %v1768_v38, %v1522_v60 }
 0x138   :  { %605 = vmatpush.bf16.msrb.mxu3 %v1529_v3  ;;  %v1533_v2 = vor.u32 %v1770_v5, %v1530_v7  ;;  %v1521_v29 = vor.u32 %v1769_v35, %v1520_v31  ;;  %v1512_v3 = vld [vmem:[#allocation2 + $0xb0] sm:$0xf]  ;;  %v1449_v7 = vor.u32 %v1751_v1, %v1448_v63  ;;  %v1766_v31 = vld [vmem:[#allocation2 + $0xb4] sm:$0xf]  ;;  %v1765_v60 = vld [vmem:[#allocation2 + $0xa4] sm:$0xf0] }
 0x139   :  { %v2333_v61 = vadd.f32 1e-05, %v338_v32  ;;  %v329_v37 = vmul.f32 %v2331_v28, %v2331_v28  ;;  %v1458_v32 = vld [vmem:[#allocation2 + $0x48] sm:$0xf0] }
 0x13a   :  { %631 = vmatpush.bf16.msra.mxu1 %v1533_v2  ;;  %v1461_v58 = vor.u32 %v1752_v0, %v1458_v32  ;;  %594 = vmatpush.bf16.msrb.mxu2 %v1449_v7  ;;  %v1440_v32 = vld [vmem:[#allocation2 + $0x20] sm:$0xf] }
 0x13b   :  { %1836 = vrsqrt.f32 %v2333_v61  ;;  %v333_v8 = vrot.slane %v329_v37, 7  ;;  %vm348_vm3 = vweird.f32 %v2333_v61 }
 0x13c   :  { %606 = vmatpush.bf16.msrb.mxu3 %v1521_v29  ;;  %619 = vmatpush.bf16.msra.mxu0 %v1461_v58  ;;  %v1749_v29 = vld [vmem:[#allocation2 + $0x24] sm:$0xf0]  ;;  %v1504_v58 = vld [vmem:[#allocation2 + $0xa0] sm:$0xf] }
 0x13d   :  { %v337_v62 = vsub.f32 %v2331_v28, %v333_v8  ;;  %v1767_v8 = vld [vmem:[#allocation2 + $0xb4] sm:$0xf0]  ;;  %v1441_v38 = vor.u32 %v1749_v29, %v1440_v32  ;;  %v1505_v1 = vor.u32 %v1765_v60, %v1504_v58  ;;  %v1762_v29 = vld [vmem:[#allocation2 + $0x94] sm:$0xf]  ;;  %v1498_v58 = vld [vmem:[#allocation2 + $0x98] sm:$0xf0] }
 0x13e   :  { %632 = vmatpush.bf16.msra.mxu1 %v1525_v59  ;;  %v1513_v36 = vor.u32 %v1767_v8, %v1512_v3  ;;  %v1442_v59 = vld [vmem:[#allocation2 + $0x28] sm:$0xf0]  ;;  %v1764_v8 = vld [vmem:[#allocation2 + $0xa4] sm:$0xf] }
 0x13f   :  { %v339_v37 = vmax.f32 %v337_v62, 0.0  ;;  %v1514_v62 = vld [vmem:[#allocation2 + $0xb8] sm:$0xf0]  ;;  %595 = vmatpush.bf16.msrb.mxu2 %v1441_v38  ;;  %v1509_v7 = vor.u32 %v1764_v8, %v1506_v26  ;;  %v1761_v8 = vld [vmem:[#allocation2 + $0x84] sm:$0xf0] }
 0x140   :  { %v1517_v35 = vor.u32 %v1766_v31, %v1514_v62  ;;  %607 = vmatpush.bf16.msrb.mxu3 %v1513_v36  ;;  %620 = vmatpush.bf16.msra.mxu0 %v1453_v30  ;;  %v1433_v31 = vor.u32 %v1747_v34, %v1432_v39  ;;  %v1763_v62 = vld [vmem:[#allocation2 + $0x94] sm:$0xf0]  ;;  %v1746_v30 = vld [vmem:[#allocation2 + $0x14] sm:$0xf]  ;;  %v1744_v39 = vld [vmem:[#allocation2 + $0x4] sm:$0xf] }
 0x141   :  { %v2339_v4 = vpop.eup %1836  ;;  %v2341_v5 = vadd.f32 1e-05, %v339_v37  ;;  %v1748_v37 = vld [vmem:[#allocation2 + $0x24] sm:$0xf] }
 0x142   :  { %v343_v2 = vmul.f32 %v2339_v4, %v2333_v61  ;;  %633 = vmatpush.bf16.msra.mxu1 %v1517_v35  ;;  %v1445_v3 = vor.u32 %v1748_v37, %v1442_v59  ;;  %vm349_vm2 = vweird.f32 %v2339_v4  ;;  %v1434_v35 = vld [vmem:[#allocation2 + $0x18] sm:$0xf0]  ;;  %v1424_v37 = vld [vmem:[#allocation2] sm:$0xf]  ;;  %v1745_v59 = vld [vmem:[#allocation2 + $0x4] sm:$0xf0] }
 0x143   :  { %1838 = vrsqrt.f32 %v2341_v5  ;;  %v1437_v38 = vor.u32 %v1746_v30, %v1434_v35  ;;  %vm350_vm4 = vmor %vm348_vm3, %vm349_vm2  ;;  %596 = vmatpush.bf16.msrb.mxu2 %v1433_v31  ;;  %vm358_vm6 = vweird.f32 %v2341_v5 }
 0x144   :  { %v344_v0 = vmul.f32 %v2339_v4, %v343_v2  ;;  %v1496_v2 = vld [vmem:[#allocation2 + $0x90] sm:$0xf]  ;;  %608 = vmatpush.bf16.msrb.mxu3 %v1505_v1  ;;  %621 = vmatpush.bf16.msra.mxu0 %v1445_v3  ;;  %v1501_v1 = vor.u32 %v1762_v29, %v1498_v58  ;;  %v1425_v3 = vor.u32 %v1745_v59, %v1424_v37  ;;  %v2603_v29 = vld [vmem:[#allocation22_spill] sm:$0xff]  ;;  %v2607_v59 = vld [vmem:[#allocation24_spill] sm:$0xff] }
 0x145   :  { %v2604_v58 = vld [vmem:[#allocation21_spill] sm:$0xff] }
 0x146   :  { %v345_v63 = vmul.f32 0.5, %v344_v0  ;;  %v1497_v0 = vor.u32 %v1763_v62, %v1496_v2  ;;  %634 = vmatpush.bf16.msra.mxu1 %v1509_v7  ;;  %v1760_v62 = vld [vmem:[#allocation2 + $0x84] sm:$0xf]  ;;  %v1490_v7 = vld [vmem:[#allocation2 + $0x88] sm:$0xf0] }
 0x147   :  { %v1493_v27 = vor.u32 %v1760_v62, %v1490_v7  ;;  %597 = vmatpush.bf16.msrb.mxu2 %v1425_v3  ;;  %v2610_v3 = vld [vmem:[#allocation37_spill] sm:$0xff] }
 0x148   :  { %v346_v36 = vsub.f32 1.5, %v345_v63  ;;  %v1488_v63 = vld [vmem:[#allocation2 + $0x80] sm:$0xf]  ;;  %609 = vmatpush.bf16.msrb.mxu3 %v1497_v0  ;;  %622 = vmatpush.bf16.msra.mxu0 %v1437_v38 }
 0x149   :  { %v1839_v32 = vpop.eup %1838  ;;  %v1489_v61 = vor.u32 %v1761_v8, %v1488_v63  ;;  %v2608_v63 = vld [vmem:[#allocation23_spill] sm:$0xff] }
 0x14a   :  { %v347_v60 = vmul.f32 %v2339_v4, %v346_v36  ;;  %v353_v26 = vmul.f32 %v1839_v32, %v2341_v5  ;;  %v1426_v36 = vld [vmem:[#allocation2 + $0x8] sm:$0xf0]  ;;  %635 = vmatpush.bf16.msra.mxu1 %v1501_v1  ;;  %vm359_vm5 = vweird.f32 %v1839_v32  ;;  %v2609_v1 = vld [vmem:[#allocation38_spill] sm:$0xff] }
 0x14b   :  { %v1429_v30 = vor.u32 %v1744_v39, %v1426_v36  ;;  %674 = vmatpush.msra.mxu2 %v2120_v6  ;;  %vm360_vm7 = vmor %vm358_vm6, %vm359_vm5  ;;  %v216_v6 = vld [vmem:[#allocation7] ss:$8 sm:$0x3] }
 0x14c   :  { %v351_v34 = vsel %vm350_vm4, %v2339_v4, %v347_v60  ;;  %v354_v2 = vmul.f32 %v1839_v32, %v353_v26  ;;  %610 = vmatpush.bf16.msrb.mxu3 %v1489_v61  ;;  %v2605_v60 = vld [vmem:[#allocation36_spill] sm:$0xff]  ;;  %v2606_v26 = vld [vmem:[#allocation35_spill] sm:$0xff] }
 0x14d   :  { %364 = vst [vmem:[#allocation1] sm:$0xff] %v351_v34  ;;  %623 = vmatpush.bf16.msra.mxu0 %v1429_v30  ;;  %675 = vmatpush.msra.mxu2 %v2125_v10  ;;  %v2611_v34 = vld [vmem:[#allocation26_spill] sm:$0xff]  ;;  %v2613_v61 = vld [vmem:[#allocation40_spill] sm:$0xff]  ;;  %v2614_v36 = vld [vmem:[#allocation39_spill] sm:$0xff] }
 0x14e   :  { %v355_v35 = vmul.f32 0.5, %v354_v2  ;;  %636 = vmatpush.bf16.msra.mxu1 %v1493_v27  ;;  %v2590_v27 = vld [vmem:[#allocation15_spill] sm:$0xff]  ;;  %v2612_v2 = vld [vmem:[#allocation25_spill] sm:$0xff] }
 0x14f   :  { %676 = vmatpush.msra.mxu2 %v2130_v12 }
 0x150   :  { %v356_v31 = vsub.f32 1.5, %v355_v35  ;;  %694 = vmatpush.msra.mxu3 %v2123_v9 }
 0x151   :  { %714 = vmatpush.msrb.mxu0 %v2213_v40  ;;  %677 = vmatpush.msra.mxu2 %v2136_v14  ;;  %v2591_v40 = vld [vmem:[#allocation30_spill] sm:$0xff] }
 0x152   :  { %v357_v4 = vmul.f32 %v1839_v32, %v356_v31  ;;  %734 = vmatpush.msrb.mxu1 %v2216_v41  ;;  %695 = vmatpush.msra.mxu3 %v2127_v11  ;;  %v2592_v41 = vld [vmem:[#allocation29_spill] sm:$0xff] }
 0x153   :  { %715 = vmatpush.msrb.mxu0 %v2219_v42  ;;  %678 = vmatpush.msra.mxu2 %v2142_v16  ;;  %v2593_v42 = vld [vmem:[#allocation41_spill] sm:$0xff] }
 0x154   :  { %v361_v0 = vsel %vm360_vm7, %v1839_v32, %v357_v4  ;;  %735 = vmatpush.msrb.mxu1 %v2223_v43  ;;  %696 = vmatpush.msra.mxu3 %v2133_v13  ;;  %v103_v13 = vlaneseq }
 0x155   :  { %365 = vst [vmem:[#allocation1 + $0x9] sm:$0xff] %v361_v0  ;;  %716 = vmatpush.msrb.mxu0 %v2226_v44  ;;  %679 = vmatpush.msra.mxu2 %v2148_v18  ;;  %v218_v18 = vld [vmem:[#allocation7 + $0x1] ss:$8 sm:$0x3] }
 0x156   :  { %736 = vmatpush.msrb.mxu1 %v2229_v45  ;;  %697 = vmatpush.msra.mxu3 %v2139_v15  ;;  %v2594_v45 = vld [vmem:[#allocation42_spill] sm:$0xff] }
 0x157   :  { %717 = vmatpush.msrb.mxu0 %v2232_v46  ;;  %680 = vmatpush.msra.mxu2 %v2154_v20  ;;  %v2586_v20 = vld [vmem:[#allocation13_spill] sm:$0xff] }
 0x158   :  { %737 = vmatpush.msrb.mxu1 %v2235_v47  ;;  %698 = vmatpush.msra.mxu3 %v2145_v17  ;;  %v104_v17 = vshrl.u32 %v103_v13, 7 }
 0x159   :  { %718 = vmatpush.msrb.mxu0 %v2240_v48  ;;  %681 = vmatpush.msra.mxu2 %v2160_v22  ;;  %v2587_v22 = vld [vmem:[#allocation28_spill] sm:$0xff]  ;;  %v2595_v48 = vld [vmem:[#allocation18_spill] sm:$0xff] }
 0x15a   :  { %738 = vmatpush.msrb.mxu1 %v2242_v49  ;;  %699 = vmatpush.msra.mxu3 %v2151_v19  ;;  %v2585_v19 = vld [vmem:[#allocation14_spill] sm:$0xff]  ;;  %vm105_vm8 = vcmp.lt.s32.totalorder %v104_v17, 4  ;;  %v2596_v49 = vld [vmem:[#allocation17_spill] sm:$0xff] }
 0x15b   :  { %719 = vmatpush.msrb.mxu0 %v2246_v50  ;;  %682 = vmatpush.msra.mxu2 %v2166_v24  ;;  %v2597_v50 = vld [vmem:[#allocation32_spill] sm:$0xff] }
 0x15c   :  { %v367_v9 = vld [vmem:[#allocation1 + $0x1] ss:$9 sm:$0xff]  ;;  %739 = vmatpush.msrb.mxu1 %v2248_v51  ;;  %700 = vmatpush.msra.mxu3 %v2157_v21 }
 0x15d   :  { %v369_v10 = vmul.f32 %v367_v9, %v216_v6  ;;  %720 = vmatpush.msrb.mxu0 %v2252_v52  ;;  %683 = vmatpush.msra.mxu2 %v2586_v20  ;;  %v2598_v51 = vld [vmem:[#allocation31_spill] sm:$0xff] }
 0x15e   :  { %740 = vmatpush.msrb.mxu1 %v2254_v53  ;;  %701 = vmatpush.msra.mxu3 %v2163_v23  ;;  %v2588_v23 = vld [vmem:[#allocation27_spill] sm:$0xff] }
 0x15f   :  { %v371_v11 = vperm.slane %v369_v10, 0  ;;  %v372_v12 = vperm.slane %v369_v10, 1  ;;  %721 = vmatpush.msrb.mxu0 %v2258_v54  ;;  %684 = vmatpush.msra.mxu2 %v2590_v27  ;;  %v2599_v54 = vld [vmem:[#allocation20_spill] sm:$0xff] }
 0x160   :  { %741 = vmatpush.msrb.mxu1 %v2260_v55  ;;  %702 = vmatpush.msra.mxu3 %v2169_v25  ;;  %v2589_v25 = vld [vmem:[#allocation16_spill] sm:$0xff]  ;;  %v2600_v55 = vld [vmem:[#allocation19_spill] sm:$0xff] }
 0x161   :  { %v376_v14 = vmul.f32 %v372_v12, %v2331_v28  ;;  %v375_v15 = vmul.f32 %v371_v11, %v2326_v33  ;;  %722 = vmatpush.msrb.mxu0 %v2264_v56  ;;  %v383_v43 = vmul.f32 %v371_v11, %v2593_v42  ;;  %v384_v46 = vmul.f32 %v372_v12, %v2594_v45  ;;  %v2601_v33 = vld [vmem:[#allocation34_spill] sm:$0xff]  ;;  %v2602_v28 = vld [vmem:[#allocation33_spill] sm:$0xff] }
 0x162   :  { %742 = vmatpush.msrb.mxu1 %v2266_v57  ;;  %703 = vmatpush.msra.mxu3 %v2585_v19  ;;  %v2049_v56 = vmov 0.0  }
 0x163   :  { %v379_v16 = vrot.slane %v376_v14, 7  ;;  %723 = vmatpush.msrb.mxu0 %v2588_v23  ;;  %685 = vmatpush.msra.mxu2 %v2596_v49  ;;  %v2411_v57 = vsel %vm105_vm8, 1.0, %v2049_v56  ;;  %v1791_v56 = vld [vmem:[#allocation4 + $0x74] sm:$0xf0] }
 0x164   :  { %743 = vmatpush.msrb.mxu1 %v2587_v22  ;;  %704 = vmatpush.msra.mxu3 %v2589_v25 }
 0x165   :  { %v380_v21 = vsel %vm245_vm1, %v375_v15, %v379_v16  ;;  %724 = vmatpush.msrb.mxu0 %v2592_v41  ;;  %686 = vmatpush.msra.mxu2 %v2600_v55  ;;  %v1608_v55 = vld [vmem:[#allocation4 + $0x70] sm:$0xf] }
 0x166   :  { %v382_v24 = vsub.f32 %v218_v18, %v380_v21  ;;  %744 = vmatpush.msrb.mxu1 %v2591_v40  ;;  %705 = vmatpush.msra.mxu3 %v2595_v48 }
 0x167   :  { %725 = vmatpush.msrb.mxu0 %v2598_v51  ;;  %687 = vmatpush.msra.mxu2 %v2604_v58 }
 0x168   :  { %v386_v44 = vperm.slane %v382_v24, 0  ;;  %v387_v47 = vperm.slane %v382_v24, 1  ;;  %745 = vmatpush.msrb.mxu1 %v2597_v50  ;;  %706 = vmatpush.msra.mxu3 %v2599_v54 }
 0x169   :  { %726 = vmatpush.msrb.mxu0 %v2602_v28  ;;  %688 = vmatpush.msra.mxu2 %v2608_v63  ;;  %v1609_v28 = vor.u32 %v1791_v56, %v1608_v55  ;;  %v1576_v56 = vld [vmem:[#allocation4 + $0x30] sm:$0xf] }
 0x16a   :  { %v390_v52 = vadd.f32 %v386_v44, %v383_v43  ;;  %v391_v53 = vadd.f32 %v387_v47, %v384_v46  ;;  %746 = vmatpush.msrb.mxu1 %v2601_v33  ;;  %707 = vmatpush.msra.mxu3 %v2603_v29  ;;  %v1672_v33 = vld [vmem:[#allocation4 + $0xf0] sm:$0xf]  ;;  %v1610_v29 = vld [vmem:[#allocation4 + $0x78] sm:$0xf0] }
 0x16b   :  { %727 = vmatpush.msrb.mxu0 %v2606_v26  ;;  %689 = vmatpush.msra.mxu2 %v2612_v2  ;;  %v1664_v2 = vld [vmem:[#allocation4 + $0xe0] sm:$0xf] }
 0x16c   :  { %v392_v5 = vmax.f32 %v390_v52, 0.0  ;;  %v393_v32 = vmax.f32 %v391_v53, 0.0  ;;  %747 = vmatpush.msrb.mxu1 %v2605_v60  ;;  %708 = vmatpush.msra.mxu3 %v2607_v59 }
 0x16d   :  { %728 = vmatpush.msrb.mxu0 %v2610_v3  ;;  %v1789_v3 = vld [vmem:[#allocation4 + $0x64] sm:$0xf0] }
 0x16e   :  { %v394_v38 = vmul.f32 %v2411_v57, %v392_v5  ;;  %v395_v37 = vmul.f32 %v2411_v57, %v393_v32  ;;  %748 = vmatpush.msrb.mxu1 %v2609_v1  ;;  %709 = vmatpush.msra.mxu3 %v2611_v34  ;;  %v1807_v5 = vld [vmem:[#allocation4 + $0xf4] sm:$0xf0]  ;;  %v1790_v32 = vld [vmem:[#allocation4 + $0x74] sm:$0xf]  ;;  %v1600_v1 = vld [vmem:[#allocation4 + $0x60] sm:$0xf] }
 0x16f   :  { %729 = vmatpush.msrb.mxu0 %v2614_v36  ;;  %v1673_v60 = vor.u32 %v1807_v5, %v1672_v33  ;;  %v1613_v26 = vor.u32 %v1790_v32, %v1610_v29  ;;  %v1601_v34 = vor.u32 %v1789_v3, %v1600_v1  ;;  %v1788_v36 = vld [vmem:[#allocation4 + $0x64] sm:$0xf]  ;;  %v1783_v33 = vld [vmem:[#allocation4 + $0x34] sm:$0xf0]  ;;  %v1640_v5 = vld [vmem:[#allocation4 + $0xb0] sm:$0xf] }
 0x170   :  { %v396_v8 = vpack.c.bf16 %v394_v38, %v394_v38  ;;  %v397_v39 = vpack.c.bf16 %v395_v37, %v395_v37  ;;  %749 = vmatpush.msrb.mxu1 %v2613_v61  ;;  %v1806_v38 = vld [vmem:[#allocation4 + $0xf4] sm:$0xf]  ;;  %v1674_v37 = vld [vmem:[#allocation4 + $0xf8] sm:$0xf0]  ;;  %v1805_v61 = vld [vmem:[#allocation4 + $0xe4] sm:$0xf0] }
 0x171   :  { %v1677_v59 = vor.u32 %v1806_v38, %v1674_v37  ;;  %v1799_v32 = vld [vmem:[#allocation4 + $0xb4] sm:$0xf0]  ;;  %v1782_v29 = vld [vmem:[#allocation4 + $0x34] sm:$0xf]  ;;  %v1642_v37 = vld [vmem:[#allocation4 + $0xb8] sm:$0xf0] }
 0x172   :  { %598 = vmatmul.bf16.vlgmr.msrb.gmra.mxu2 %v396_v8  ;;  %611 = vmatmul.bf16.vlgmr.msrb.gmra.mxu3 %v397_v39  ;;  %v1798_v38 = vld [vmem:[#allocation4 + $0xb4] sm:$0xf]  ;;  %v1568_v3 = vld [vmem:[#allocation4 + $0x20] sm:$0xf] }
 0x173   :  { %624 = vmatmul.bf16.vlgmr.msra.gmra.mxu0 %v396_v8  ;;  %637 = vmatmul.bf16.vlgmr.msra.gmra.mxu1 %v397_v39  ;;  %v1645_v1 = vor.u32 %v1798_v38, %v1642_v37  ;;  %v1852_v38 = vld [vmem:[#allocation6 + $0x1e0] sm:$0xff] }
 0x174   :  { %1016 = vmatpush.bf16.msrb.mxu2 %v1609_v28  ;;  %1029 = vmatpush.bf16.msrb.mxu3 %v1673_v60  ;;  %v1577_v28 = vor.u32 %v1783_v33, %v1576_v56  ;;  %v1641_v60 = vor.u32 %v1799_v32, %v1640_v5  ;;  %v1618_v56 = vld [vmem:[#allocation4 + $0x88] sm:$0xf0]  ;;  %v1848_v5 = vld [vmem:[#allocation6 + $0xf0] sm:$0xff]  ;;  %v1853_v37 = vld [vmem:[#allocation6 + $0xe0] sm:$0xff] }
 0x175   :  { %1042 = vmatpush.bf16.msra.mxu0 %v1613_v26  ;;  %1055 = vmatpush.bf16.msra.mxu1 %v1677_v59  ;;  %v1578_v26 = vld [vmem:[#allocation4 + $0x38] sm:$0xf0] }
 0x178   :  { %1017 = vmatpush.bf16.msrb.mxu2 %v1601_v34 }
 0x1f0   :  { %v625_v62 = vpop.f32.mrf.mxu0  ;;  %v638_v7 = vpop.f32.mrf.mxu1 }
 0x1f1   :  { %v2429_v30 = vadd.f32 %v638_v7, %v625_v62 }
 0x1f3   :  { %v652_v35 = vrot.slane %v2429_v30, 4  ;;  %v659_v31 = vmul.f32 %v2429_v30, %v2429_v30 }
 0x1f5   :  { %v653_v4 = vadd.f32 %v652_v35, %v2429_v30  ;;  %v666_v0 = vrot.slane %v659_v31, 4  ;;  %v599_v6 = vpop.f32.mrf.mxu2  ;;  %v612_v9 = vpop.f32.mrf.mxu3  ;;  %v1665_v35 = vor.u32 %v1805_v61, %v1664_v2  ;;  %v1632_v2 = vld [vmem:[#allocation4 + $0xa0] sm:$0xf]  ;;  %v1797_v61 = vld [vmem:[#allocation4 + $0xa4] sm:$0xf0] }
 0x1f6   :  { %v2435_v10 = vadd.f32 %v612_v9, %v599_v6 }
 0x1f7   :  { %v654_v11 = vrot.slane %v653_v4, 2  ;;  %v667_v12 = vadd.f32 %v666_v0, %v659_v31  ;;  %v1602_v31 = vld [vmem:[#allocation4 + $0x68] sm:$0xf0]  ;;  %1030 = vmatpush.bf16.msrb.mxu3 %v1665_v35 }
 0x1f8   :  { %v646_v13 = vrot.slane %v2435_v10, 4  ;;  %v658_v14 = vmul.f32 %v2435_v10, %v2435_v10  ;;  %v627_v15 = vpop.f32.mrf.mxu0  ;;  %v640_v16 = vpop.f32.mrf.mxu1  ;;  %v1666_v0 = vld [vmem:[#allocation4 + $0xe8] sm:$0xf0]  ;;  %v1605_v6 = vor.u32 %v1788_v36, %v1602_v31  ;;  %v1780_v36 = vld [vmem:[#allocation4 + $0x24] sm:$0xf] }
 0x1f9   :  { %v655_v17 = vadd.f32 %v654_v11, %v653_v4  ;;  %v668_v18 = vrot.slane %v667_v12, 2  ;;  %v1804_v4 = vld [vmem:[#allocation4 + $0xe4] sm:$0xf]  ;;  %v1656_v16 = vld [vmem:[#allocation4 + $0xd0] sm:$0xf] }
 0x1fa   :  { %v647_v19 = vadd.f32 %v646_v13, %v2435_v10  ;;  %v660_v20 = vrot.slane %v658_v14, 4  ;;  %v1669_v9 = vor.u32 %v1804_v4, %v1666_v0  ;;  %v1592_v13 = vld [vmem:[#allocation4 + $0x50] sm:$0xf]  ;;  %1043 = vmatpush.bf16.msra.mxu0 %v1605_v6  ;;  %v1570_v35 = vld [vmem:[#allocation4 + $0x28] sm:$0xf0] }
 0x1fb   :  { %v656_v21 = vrot.slane %v655_v17, 1  ;;  %v669_v22 = vadd.f32 %v668_v18, %v667_v12  ;;  %v1786_v18 = vld [vmem:[#allocation4 + $0x54] sm:$0xf]  ;;  %v1796_v31 = vld [vmem:[#allocation4 + $0xa4] sm:$0xf]  ;;  %v1573_v6 = vor.u32 %v1780_v36, %v1570_v35  ;;  %v1863_v36 = vld [vmem:[#allocation6 + $0x1c8] sm:$0xff] }
 0x1fc   :  { %v648_v23 = vrot.slane %v647_v19, 2  ;;  %v661_v24 = vadd.f32 %v660_v20, %v658_v14  ;;  %v1787_v14 = vld [vmem:[#allocation4 + $0x54] sm:$0xf0]  ;;  %1056 = vmatpush.bf16.msra.mxu1 %v1669_v9  ;;  %v1634_v4 = vld [vmem:[#allocation4 + $0xa8] sm:$0xf0]  ;;  %v1865_v35 = vld [vmem:[#allocation6 + $0xb0] sm:$0xff] }
 0x1fd   :  { %v601_v25 = vpop.f32.mrf.mxu2  ;;  %v614_v27 = vpop.f32.mrf.mxu3  ;;  %v670_v40 = vrot.slane %v669_v22, 1  ;;  %v657_v43 = vadd.f32 %v656_v21, %v655_v17  ;;  %v1593_v15 = vor.u32 %v1787_v14, %v1592_v13  ;;  %v1803_v17 = vld [vmem:[#allocation4 + $0xd4] sm:$0xf0]  ;;  %v1637_v9 = vor.u32 %v1796_v31, %v1634_v4 }
 0x1fe   :  { %v649_v41 = vadd.f32 %v648_v23, %v647_v19  ;;  %v662_v42 = vrot.slane %v661_v24, 2  ;;  %v1657_v21 = vor.u32 %v1803_v17, %v1656_v16  ;;  %v1658_v25 = vld [vmem:[#allocation4 + $0xd8] sm:$0xf0]  ;;  %v1795_v16 = vld [vmem:[#allocation4 + $0x94] sm:$0xf0] }
 0x1ff   :  { %v671_v44 = vadd.f32 %v670_v40, %v669_v22  ;;  %v1594_v22 = vld [vmem:[#allocation4 + $0x58] sm:$0xf0]  ;;  %1018 = vmatpush.bf16.msrb.mxu2 %v1593_v15  ;;  %v1624_v15 = vld [vmem:[#allocation4 + $0x90] sm:$0xf]  ;;  %v1778_v17 = vld [vmem:[#allocation4 + $0x14] sm:$0xf] }
 0x200   :  { %v650_v45 = vrot.slane %v649_v41, 1  ;;  %v663_v46 = vadd.f32 %v662_v42, %v661_v24  ;;  %v1597_v23 = vor.u32 %v1786_v18, %v1594_v22  ;;  %v1802_v24 = vld [vmem:[#allocation4 + $0xd4] sm:$0xf]  ;;  %1031 = vmatpush.bf16.msrb.mxu3 %v1657_v21  ;;  %v1785_v42 = vld [vmem:[#allocation4 + $0x44] sm:$0xf0]  ;;  %v1625_v21 = vor.u32 %v1795_v16, %v1624_v15  ;;  %v1866_v31 = vld [vmem:[#allocation6 + $0xb8] sm:$0xff] }
 0x201   :  { %v673_v47 = vsel %vm245_vm1, %v657_v43, %v671_v44  ;;  %v1661_v40 = vor.u32 %v1802_v24, %v1658_v25  ;;  %v1648_v43 = vld [vmem:[#allocation4 + $0xc0] sm:$0xf]  ;;  %v1562_v22 = vld [vmem:[#allocation4 + $0x18] sm:$0xf0]  ;;  %v1878_v24 = vld [vmem:[#allocation6 + $0x188] sm:$0xff] }
 0x202   :  { %710 = vmatmul.f32.vlgmr.msra.gmra.mxu3 %v673_v47  ;;  %750 = vmatmul.f32.vlgmr.msrb.gmra.mxu1 %v673_v47  ;;  %v664_v48 = vrot.slane %v663_v46, 1  ;;  %v651_v49 = vadd.f32 %v650_v45, %v649_v41  ;;  %v1584_v41 = vld [vmem:[#allocation4 + $0x40] sm:$0xf]  ;;  %v1801_v45 = vld [vmem:[#allocation4 + $0xc4] sm:$0xf0]  ;;  %v1565_v25 = vor.u32 %v1778_v17, %v1562_v22  ;;  %v1873_v17 = vld [vmem:[#allocation6 + $0x90] sm:$0xff] }
 0x203   :  { %1044 = vmatpush.bf16.msra.mxu0 %v1597_v23  ;;  %v1585_v44 = vor.u32 %v1785_v42, %v1584_v41  ;;  %v1586_v47 = vld [vmem:[#allocation4 + $0x48] sm:$0xf0]  ;;  %1057 = vmatpush.bf16.msra.mxu1 %v1661_v40  ;;  %v1794_v23 = vld [vmem:[#allocation4 + $0x94] sm:$0xf]  ;;  %v1552_v40 = vld [vmem:[#allocation4] sm:$0xf] }
 0x204   :  { %v665_v50 = vadd.f32 %v664_v48, %v663_v46  ;;  %v1784_v46 = vld [vmem:[#allocation4 + $0x44] sm:$0xf] }
 0x205   :  { %1019 = vmatpush.bf16.msrb.mxu2 %v1585_v44  ;;  %v1616_v44 = vld [vmem:[#allocation4 + $0x80] sm:$0xf] }
 0x206   :  { %v672_v51 = vsel %vm245_vm1, %v651_v49, %v665_v50  ;;  %v1649_v49 = vor.u32 %v1801_v45, %v1648_v43  ;;  %v1589_v50 = vor.u32 %v1784_v46, %v1586_v47  ;;  %v1777_v43 = vld [vmem:[#allocation4 + $0x4] sm:$0xf0] }
 0x207   :  { %690 = vmatmul.f32.vlgmr.msra.gmra.mxu2 %v672_v51  ;;  %730 = vmatmul.f32.vlgmr.msrb.gmra.mxu0 %v672_v51  ;;  %v1800_v51 = vld [vmem:[#allocation4 + $0xc4] sm:$0xf]  ;;  %v1793_v45 = vld [vmem:[#allocation4 + $0x84] sm:$0xf0]  ;;  %v1553_v46 = vor.u32 %v1777_v43, %v1552_v40  ;;  %v1882_v43 = vld [vmem:[#allocation6 + $0x178] sm:$0xff] }
 0x208   :  { %1032 = vmatpush.bf16.msrb.mxu3 %v1649_v49  ;;  %1045 = vmatpush.bf16.msra.mxu0 %v1589_v50  ;;  %v1617_v47 = vor.u32 %v1793_v45, %v1616_v44  ;;  %v1554_v49 = vld [vmem:[#allocation4 + $0x8] sm:$0xf0]  ;;  %v1792_v50 = vld [vmem:[#allocation4 + $0x84] sm:$0xf]  ;;  %v1884_v45 = vld [vmem:[#allocation6 + $0x78] sm:$0xff] }
 0x209   :  { %1020 = vmatpush.bf16.msrb.mxu2 %v1577_v28  ;;  %v1621_v33 = vor.u32 %v1792_v50, %v1618_v56  ;;  %v1883_v44 = vld [vmem:[#allocation6 + $0x160] sm:$0xff]  ;;  %v1889_v50 = vld [vmem:[#allocation6 + $0x50] sm:$0xff] }
 0x20c   :  { %1033 = vmatpush.bf16.msrb.mxu3 %v1641_v60 }
 0x27f   :  { %v751_v52 = vpop.f32.mrf.mxu1 }
 0x284   :  { %v731_v53 = vpop.f32.mrf.mxu0 }
 0x285   :  { %v2443_v54 = vadd.f32 %v751_v52, %v731_v53  ;;  %v711_v8 = vpop.f32.mrf.mxu3  ;;  %v1650_v52 = vld [vmem:[#allocation4 + $0xc8] sm:$0xf0] }
 0x286   :  { %v1653_v53 = vor.u32 %v1800_v51, %v1650_v52 }
 0x287   :  { %v755_v58 = vmul.f32 %v2443_v54, %v2443_v54 }
 0x288   :  { %1058 = vmatpush.bf16.msra.mxu1 %v1653_v53 }
 0x289   :  { %v759_v63 = vrot.slane %v755_v58, 7 }
 0x28a   :  { %v691_v39 = vpop.f32.mrf.mxu2 }
 0x28b   :  { %v763_v62 = vsub.f32 %v2443_v54, %v759_v63  ;;  %v2448_v7 = vadd.f32 %v711_v8, %v691_v39  ;;  %v1581_v63 = vor.u32 %v1782_v29, %v1578_v26  ;;  %v1781_v8 = vld [vmem:[#allocation4 + $0x24] sm:$0xf0]  ;;  %v1849_v29 = vld [vmem:[#allocation6 + $0x1f0] sm:$0xff]  ;;  %v1851_v26 = vld [vmem:[#allocation6 + $0x1f8] sm:$0xff] }
 0x28c   :  { %v1569_v34 = vor.u32 %v1781_v8, %v1568_v3  ;;  %1059 = vmatpush.bf16.msra.mxu1 %v1645_v1  ;;  %v1857_v1 = vld [vmem:[#allocation6 + $0xd0] sm:$0xff]  ;;  %v1858_v3 = vld [vmem:[#allocation6 + $0xd8] sm:$0xff] }
 0x28d   :  { %v765_v11 = vmax.f32 %v763_v62, 0.0  ;;  %v754_v12 = vmul.f32 %v2448_v7, %v2448_v7  ;;  %1046 = vmatpush.bf16.msra.mxu0 %v1581_v63  ;;  %v1633_v62 = vor.u32 %v1797_v61, %v1632_v2  ;;  %v1855_v63 = vld [vmem:[#allocation6 + $0x1e8] sm:$0xff]  ;;  %v1859_v8 = vld [vmem:[#allocation6 + $0x1d8] sm:$0xff] }
 0x28e   :  { %1021 = vmatpush.bf16.msrb.mxu2 %v1569_v34  ;;  %v1861_v34 = vld [vmem:[#allocation6 + $0xc0] sm:$0xff]  ;;  %v1862_v2 = vld [vmem:[#allocation6 + $0xc8] sm:$0xff] }
 0x28f   :  { %v2452_v19 = vadd.f32 1e-05, %v765_v11  ;;  %v758_v20 = vrot.slane %v754_v12, 7  ;;  %v1560_v11 = vld [vmem:[#allocation4 + $0x10] sm:$0xf]  ;;  %1034 = vmatpush.bf16.msrb.mxu3 %v1633_v62 }
 0x290   :  { %v1779_v12 = vld [vmem:[#allocation4 + $0x14] sm:$0xf0]  ;;  %1060 = vmatpush.bf16.msra.mxu1 %v1637_v9  ;;  %v643_v61 = vld [vmem:[#allocation7 + $0x2] ss:$8 sm:$0x3]  ;;  %v1864_v62 = vld [vmem:[#allocation6 + $0x1b0] sm:$0xff] }
 0x291   :  { %1840 = vrsqrt.f32 %v2452_v19  ;;  %v762_v27 = vsub.f32 %v2448_v7, %v758_v20  ;;  %v1561_v14 = vor.u32 %v1779_v12, %v1560_v11  ;;  %vm784_vm10 = vweird.f32 %v2452_v19  ;;  %1047 = vmatpush.bf16.msra.mxu0 %v1573_v6  ;;  %v1868_v6 = vld [vmem:[#allocation6 + $0x1a0] sm:$0xff]  ;;  %v1870_v12 = vld [vmem:[#allocation6 + $0xa8] sm:$0xff] }
 0x292   :  { %v1869_v11 = vld [vmem:[#allocation6 + $0xa0] sm:$0xff] }
 0x293   :  { %v764_v48 = vmax.f32 %v762_v27, 0.0  ;;  %v1626_v27 = vld [vmem:[#allocation4 + $0x98] sm:$0xf0]  ;;  %1022 = vmatpush.bf16.msrb.mxu2 %v1561_v14  ;;  %1035 = vmatpush.bf16.msrb.mxu3 %v1625_v21  ;;  %v1872_v14 = vld [vmem:[#allocation6 + $0x190] sm:$0xff]  ;;  %v1876_v21 = vld [vmem:[#allocation6 + $0x180] sm:$0xff] }
 0x295   :  { %v2456_v55 = vadd.f32 1e-05, %v764_v48  ;;  %v1776_v48 = vld [vmem:[#allocation4 + $0x4] sm:$0xf]  ;;  %1048 = vmatpush.bf16.msra.mxu0 %v1565_v25  ;;  %v1879_v25 = vld [vmem:[#allocation6 + $0x170] sm:$0xff] }
 0x296   :  { %v1557_v53 = vor.u32 %v1776_v48, %v1554_v49  ;;  %v1886_v48 = vld [vmem:[#allocation6 + $0x168] sm:$0xff]  ;;  %v1887_v49 = vld [vmem:[#allocation6 + $0x150] sm:$0xff] }
 0x297   :  { %v2458_v58 = vpop.eup %1840  ;;  %1842 = vrsqrt.f32 %v2456_v55  ;;  %1023 = vmatpush.bf16.msrb.mxu2 %v1553_v46  ;;  %1036 = vmatpush.bf16.msrb.mxu3 %v1617_v47  ;;  %vm774_vm13 = vweird.f32 %v2456_v55  ;;  %v1885_v46 = vld [vmem:[#allocation6 + $0x60] sm:$0xff] }
 0x298   :  { %v779_v59 = vmul.f32 %v2458_v58, %v2452_v19  ;;  %vm785_vm9 = vweird.f32 %v2458_v58  ;;  %v1629_v19 = vor.u32 %v1794_v23, %v1626_v27  ;;  %v1877_v23 = vld [vmem:[#allocation6 + $0x80] sm:$0xff] }
 0x299   :  { %vm2469_vm11 = vmor %vm784_vm10, %vm785_vm9  ;;  %1049 = vmatpush.bf16.msra.mxu0 %v1557_v53  ;;  %v645_v27 = vld [vmem:[#allocation7 + $0x3] ss:$8 sm:$0x3] }
 0x29a   :  { %v780_v39 = vmul.f32 %v2458_v58, %v779_v59  ;;  %1061 = vmatpush.bf16.msra.mxu1 %v1629_v19  ;;  %v1854_v59 = vld [vmem:[#allocation6 + $0xe8] sm:$0xff]  ;;  %v1881_v19 = vld [vmem:[#allocation6 + $0x70] sm:$0xff] }
 0x29b   :  { %1100 = vmatpush.msra.mxu2 %v1848_v5  ;;  %1120 = vmatpush.msra.mxu3 %v1849_v29  ;;  %v1892_v5 = vld [vmem:[#allocation6 + $0x58] sm:$0xff] }
 0x29c   :  { %v781_v0 = vmul.f32 0.5, %v780_v39  ;;  %v1860_v39 = vld [vmem:[#allocation6 + $0x1c0] sm:$0xff] }
 0x29d   :  { %v1843_v13 = vpop.eup %1842  ;;  %1121 = vmatpush.msra.mxu3 %v1852_v38  ;;  %1101 = vmatpush.msra.mxu2 %v1853_v37  ;;  %v1896_v38 = vld [vmem:[#allocation6 + $0x48] sm:$0xff] }
 0x29e   :  { %v782_v18 = vsub.f32 1.5, %v781_v0  ;;  %v769_v20 = vmul.f32 %v1843_v13, %v2456_v55  ;;  %vm775_vm12 = vweird.f32 %v1843_v13  ;;  %1062 = vmatpush.bf16.msra.mxu1 %v1621_v33  ;;  %v1856_v55 = vld [vmem:[#allocation6 + $0x1d0] sm:$0xff]  ;;  %v1867_v0 = vld [vmem:[#allocation6 + $0x1b8] sm:$0xff] }
 0x29f   :  { %vm776_vm14 = vmor %vm774_vm13, %vm775_vm12  ;;  %1122 = vmatpush.msra.mxu3 %v1856_v55  ;;  %1102 = vmatpush.msra.mxu2 %v1857_v1  ;;  %v1890_v33 = vld [vmem:[#allocation6 + $0x158] sm:$0xff]  ;;  %v1901_v1 = vld [vmem:[#allocation6 + $0x20] sm:$0xff] }
 0x2a0   :  { %v783_v41 = vmul.f32 %v2458_v58, %v782_v18  ;;  %v770_v42 = vmul.f32 %v1843_v13, %v769_v20  ;;  %v1874_v18 = vld [vmem:[#allocation6 + $0x98] sm:$0xff] }
 0x2a1   :  { %1123 = vmatpush.msra.mxu3 %v1860_v39  ;;  %1103 = vmatpush.msra.mxu2 %v1861_v34  ;;  %v1875_v20 = vld [vmem:[#allocation6 + $0x198] sm:$0xff]  ;;  %v1902_v39 = vld [vmem:[#allocation6 + $0x128] sm:$0xff]  ;;  %v1903_v34 = vld [vmem:[#allocation6 + $0x110] sm:$0xff] }
 0x2a2   :  { %v787_v51 = vsel %vm2469_vm11, %v2458_v58, %v783_v41  ;;  %v771_v52 = vmul.f32 0.5, %v770_v42  ;;  %v1850_v58 = vld [vmem:[#allocation6 + $0xf8] sm:$0xff]  ;;  %1160 = vmatpush.msrb.mxu1 %v1851_v26  ;;  %v1880_v42 = vld [vmem:[#allocation6 + $0x88] sm:$0xff]  ;;  %v1895_v26 = vld [vmem:[#allocation6 + $0x130] sm:$0xff] }
 0x2a3   :  { %791 = vst [vmem:[#allocation1 + $0x9] sm:$0xff] %v787_v51  ;;  %1140 = vmatpush.msrb.mxu0 %v1850_v58  ;;  %1124 = vmatpush.msra.mxu3 %v1864_v62  ;;  %v1900_v55 = vld [vmem:[#allocation6 + $0x38] sm:$0xff] }
 0x2a4   :  { %v772_v28 = vsub.f32 1.5, %v771_v52  ;;  %1161 = vmatpush.msrb.mxu1 %v1855_v63  ;;  %1104 = vmatpush.msra.mxu2 %v1865_v35  ;;  %v1899_v63 = vld [vmem:[#allocation6 + $0x120] sm:$0xff]  ;;  %v1906_v35 = vld [vmem:[#allocation6 + $0x118] sm:$0xff] }
 0x2a5   :  { %1141 = vmatpush.msrb.mxu0 %v1854_v59  ;;  %1125 = vmatpush.msra.mxu3 %v1868_v6  ;;  %v1898_v59 = vld [vmem:[#allocation6 + $0x138] sm:$0xff]  ;;  %v1911_v6 = vld [vmem:[#allocation6 + $0x8] sm:$0xff] }
 0x2a6   :  { %v773_v32 = vmul.f32 %v1843_v13, %v772_v28  ;;  %1162 = vmatpush.msrb.mxu1 %v1859_v8  ;;  %1105 = vmatpush.msra.mxu2 %v1869_v11  ;;  %v1891_v28 = vld [vmem:[#allocation6 + $0x140] sm:$0xff] }
 0x2a7   :  { %1142 = vmatpush.msrb.mxu0 %v1858_v3  ;;  %1126 = vmatpush.msra.mxu3 %v1872_v14 }
 0x2a8   :  { %v777_v60 = vsel %vm776_vm14, %v1843_v13, %v773_v32  ;;  %1163 = vmatpush.msrb.mxu1 %v1863_v36  ;;  %v1871_v13 = vld [vmem:[#allocation6 + $0x1a8] sm:$0xff]  ;;  %1106 = vmatpush.msra.mxu2 %v1873_v17  ;;  %v1893_v32 = vld [vmem:[#allocation6 + $0x40] sm:$0xff] }
 0x2a9   :  { %790 = vst [vmem:[#allocation1] sm:$0xff] %v777_v60  ;;  %1143 = vmatpush.msrb.mxu0 %v1862_v2  ;;  %1127 = vmatpush.msra.mxu3 %v1876_v21  ;;  %v1894_v60 = vld [vmem:[#allocation6 + $0x148] sm:$0xff] }
 0x2aa   :  { %1164 = vmatpush.msrb.mxu1 %v1867_v0  ;;  %1107 = vmatpush.msra.mxu2 %v1877_v23  ;;  %v1904_v2 = vld [vmem:[#allocation6 + $0x28] sm:$0xff]  ;;  %v1909_v0 = vld [vmem:[#allocation6] sm:$0xff] }
 0x2ab   :  { %1144 = vmatpush.msrb.mxu0 %v1866_v31  ;;  %1128 = vmatpush.msra.mxu3 %v1879_v25  ;;  %v1907_v31 = vld [vmem:[#allocation6 + $0x100] sm:$0xff] }
 0x2ac   :  { %1165 = vmatpush.msrb.mxu1 %v1871_v13  ;;  %1108 = vmatpush.msra.mxu2 %v1881_v19 }
 0x2ad   :  { %1145 = vmatpush.msrb.mxu0 %v1870_v12  ;;  %1129 = vmatpush.msra.mxu3 %v1883_v44 }
 0x2ae   :  { %1166 = vmatpush.msrb.mxu1 %v1875_v20  ;;  %1109 = vmatpush.msra.mxu2 %v1885_v46 }
 0x2af   :  { %1146 = vmatpush.msrb.mxu0 %v1874_v18  ;;  %1130 = vmatpush.msra.mxu3 %v1887_v49 }
 0x2b0   :  { %v793_v4 = vld [vmem:[#allocation1 + $0x1] ss:$9 sm:$0xff]  ;;  %1167 = vmatpush.msrb.mxu1 %v1878_v24  ;;  %1110 = vmatpush.msra.mxu2 %v1889_v50 }
 0x2b1   :  { %v795_v9 = vmul.f32 %v793_v4, %v643_v61  ;;  %1147 = vmatpush.msrb.mxu0 %v1880_v42  ;;  %1131 = vmatpush.msra.mxu3 %v1891_v28  ;;  %v1905_v61 = vld [vmem:[#allocation6 + $0x10] sm:$0xff]  ;;  %v1908_v4 = vld [vmem:[#allocation6 + $0x18] sm:$0xff] }
 0x2b2   :  { %1168 = vmatpush.msrb.mxu1 %v1882_v43  ;;  %1111 = vmatpush.msra.mxu2 %v1893_v32 }
 0x2b3   :  { %v797_v15 = vperm.slane %v795_v9, 0  ;;  %v798_v16 = vperm.slane %v795_v9, 1  ;;  %1148 = vmatpush.msrb.mxu0 %v1884_v45  ;;  %1132 = vmatpush.msra.mxu3 %v1895_v26  ;;  %v1823_v26 = vld [vmem:[#allocation9 + $0x78] sm:$0xff] }
 0x2b4   :  { %1169 = vmatpush.msrb.mxu1 %v1886_v48 }
 0x2b5   :  { %v802_v22 = vmul.f32 %v798_v16, %v2443_v54  ;;  %v801_v40 = vmul.f32 %v797_v15, %v2448_v7  ;;  %v1888_v7 = vld [vmem:[#allocation6 + $0x68] sm:$0xff]  ;;  %v809_v51 = vmul.f32 %v797_v15, %v2435_v10  ;;  %v810_v53 = vmul.f32 %v798_v16, %v2429_v30  ;;  %v1897_v10 = vld [vmem:[#allocation6 + $0x30] sm:$0xff]  ;;  %1133 = vmatpush.msra.mxu3 %v1899_v63 }
 0x2b6   :  { %1149 = vmatpush.msrb.mxu0 %v1888_v7  ;;  %1170 = vmatpush.msrb.mxu1 %v1890_v33 }
 0x2b7   :  { %v805_v41 = vrot.slane %v802_v22, 7  ;;  %1112 = vmatpush.msra.mxu2 %v1897_v10  ;;  %1134 = vmatpush.msra.mxu3 %v1903_v34 }
 0x2b8   :  { %1150 = vmatpush.msrb.mxu0 %v1892_v5  ;;  %1171 = vmatpush.msrb.mxu1 %v1894_v60  ;;  %v1815_v60 = vld [vmem:[#allocation9 + $0x38] sm:$0xff] }
 0x2b9   :  { %v806_v54 = vsel %vm245_vm1, %v801_v40, %v805_v41  ;;  %1113 = vmatpush.msra.mxu2 %v1901_v1  ;;  %1135 = vmatpush.msra.mxu3 %v1907_v31 }
 0x2ba   :  { %v808_v47 = vsub.f32 %v645_v27, %v806_v54  ;;  %1151 = vmatpush.msrb.mxu0 %v1896_v38  ;;  %1172 = vmatpush.msrb.mxu1 %v1898_v59 }
 0x2bb   :  { %1114 = vmatpush.msra.mxu2 %v1905_v61 }
 0x2bc   :  { %v812_v52 = vperm.slane %v808_v47, 0  ;;  %v813_v56 = vperm.slane %v808_v47, 1  ;;  %1152 = vmatpush.msrb.mxu0 %v1900_v55  ;;  %1173 = vmatpush.msrb.mxu1 %v1902_v39  ;;  %v1821_v39 = vld [vmem:[#allocation9 + $0x68] sm:$0xff] }
 0x2bd   :  { %1115 = vmatpush.msra.mxu2 %v1909_v0  ;;  %v1811_v0 = vld [vmem:[#allocation9 + $0x18] sm:$0xff] }
 0x2be   :  { %v816_v29 = vadd.f32 %v812_v52, %v809_v51  ;;  %v817_v58 = vadd.f32 %v813_v56, %v810_v53  ;;  %1153 = vmatpush.msrb.mxu0 %v1904_v2  ;;  %1174 = vmatpush.msrb.mxu1 %v1906_v35  ;;  %v1820_v35 = vld [vmem:[#allocation9 + $0x60] sm:$0xff] }
 0x2c0   :  { %v818_v30 = vmax.f32 %v816_v29, 0.0  ;;  %v819_v37 = vmax.f32 %v817_v58, 0.0  ;;  %1154 = vmatpush.msrb.mxu0 %v1908_v4 }
 0x2c2   :  { %v820_v3 = vmul.f32 %v2411_v57, %v818_v30  ;;  %v821_v8 = vmul.f32 %v2411_v57, %v819_v37  ;;  %v1910_v57 = vld [vmem:[#allocation6 + $0x108] sm:$0xff]  ;;  %1155 = vmatpush.msrb.mxu0 %v1911_v6  ;;  %v1814_v30 = vld [vmem:[#allocation9 + $0x30] sm:$0xff] }
 0x2c3   :  { %1175 = vmatpush.msrb.mxu1 %v1910_v57  ;;  %v1822_v37 = vld [vmem:[#allocation9 + $0x70] sm:$0xff]  ;;  %v1819_v57 = vld [vmem:[#allocation9 + $0x58] sm:$0xff] }
 0x2c4   :  { %v822_v36 = vpack.c.bf16 %v820_v3, %v820_v3  ;;  %v823_v62 = vpack.c.bf16 %v821_v8, %v821_v8  ;;  %v1813_v8 = vld [vmem:[#allocation9 + $0x28] sm:$0xff] }
 0x2c6   :  { %1024 = vmatmul.bf16.vlgmr.msrb.gmra.mxu2 %v822_v36  ;;  %1037 = vmatmul.bf16.vlgmr.msrb.gmra.mxu3 %v823_v62 }
 0x2c7   :  { %1050 = vmatmul.bf16.vlgmr.msra.gmra.mxu0 %v822_v36  ;;  %1063 = vmatmul.bf16.vlgmr.msra.gmra.mxu1 %v823_v62  ;;  %v1812_v62 = vld [vmem:[#allocation9 + $0x20] sm:$0xff] }
 0x2c8   :  { %1377 = vmatpush.bf16.msrb.mxu2 %v1815_v60  ;;  %1390 = vmatpush.bf16.msrb.mxu3 %v1823_v26 }
 0x2cc   :  { %1378 = vmatpush.bf16.msrb.mxu2 %v1814_v30  ;;  %1391 = vmatpush.bf16.msrb.mxu3 %v1822_v37 }
 0x2d0   :  { %1379 = vmatpush.bf16.msrb.mxu2 %v1813_v8  ;;  %1392 = vmatpush.bf16.msrb.mxu3 %v1821_v39 }
 0x2d4   :  { %1380 = vmatpush.bf16.msrb.mxu2 %v1812_v62  ;;  %1393 = vmatpush.bf16.msrb.mxu3 %v1820_v35 }
 0x2d8   :  { %1381 = vmatpush.bf16.msrb.mxu2 %v1811_v0  ;;  %1394 = vmatpush.bf16.msrb.mxu3 %v1819_v57 }
 0x344   :  { %v1051_v9 = vpop.f32.mrf.mxu0  ;;  %v1064_v11 = vpop.f32.mrf.mxu1 }
 0x345   :  { %v2485_v12 = vadd.f32 %v1064_v11, %v1051_v9 }
 0x347   :  { %v1078_v13 = vrot.slane %v2485_v12, 4  ;;  %v1085_v14 = vmul.f32 %v2485_v12, %v2485_v12 }
 0x349   :  { %v1079_v15 = vadd.f32 %v1078_v13, %v2485_v12  ;;  %v1092_v16 = vrot.slane %v1085_v14, 4  ;;  %v1025_v17 = vpop.f32.mrf.mxu2  ;;  %v1038_v18 = vpop.f32.mrf.mxu3  ;;  %v1810_v13 = vld [vmem:[#allocation9 + $0x10] sm:$0xff] }
 0x34a   :  { %v2491_v20 = vadd.f32 %v1038_v18, %v1025_v17  ;;  %1382 = vmatpush.bf16.msrb.mxu2 %v1810_v13  ;;  %v1817_v17 = vld [vmem:[#allocation9 + $0x48] sm:$0xff] }
 0x34b   :  { %v1080_v21 = vrot.slane %v1079_v15, 2  ;;  %v1093_v22 = vadd.f32 %v1092_v16, %v1085_v14  ;;  %v1818_v14 = vld [vmem:[#allocation9 + $0x50] sm:$0xff]  ;;  %v1809_v16 = vld [vmem:[#allocation9 + $0x8] sm:$0xff] }
 0x34c   :  { %v1072_v23 = vrot.slane %v2491_v20, 4  ;;  %v1084_v24 = vmul.f32 %v2491_v20, %v2491_v20  ;;  %v1053_v25 = vpop.f32.mrf.mxu0  ;;  %v1066_v27 = vpop.f32.mrf.mxu1  ;;  %1395 = vmatpush.bf16.msrb.mxu3 %v1818_v14 }
 0x34d   :  { %v1081_v40 = vadd.f32 %v1080_v21, %v1079_v15  ;;  %v1094_v41 = vrot.slane %v1093_v22, 2  ;;  %v1816_v25 = vld [vmem:[#allocation9 + $0x40] sm:$0xff] }
 0x34e   :  { %v1073_v42 = vadd.f32 %v1072_v23, %v2491_v20  ;;  %v1086_v19 = vrot.slane %v1084_v24, 4  ;;  %1383 = vmatpush.bf16.msrb.mxu2 %v1809_v16 }
 0x34f   :  { %v1082_v43 = vrot.slane %v1081_v40, 1  ;;  %v1095_v44 = vadd.f32 %v1094_v41, %v1093_v22 }
 0x350   :  { %v1074_v54 = vrot.slane %v1073_v42, 2  ;;  %v1087_v45 = vadd.f32 %v1086_v19, %v1084_v24  ;;  %1396 = vmatpush.bf16.msrb.mxu3 %v1817_v17  ;;  %v1808_v24 = vld [vmem:[#allocation9] sm:$0xff] }
 0x351   :  { %v1027_v46 = vpop.f32.mrf.mxu2  ;;  %v1040_v47 = vpop.f32.mrf.mxu3  ;;  %v1096_v48 = vrot.slane %v1095_v44, 1  ;;  %v1083_v50 = vadd.f32 %v1082_v43, %v1081_v40 }
 0x352   :  { %v1075_v49 = vadd.f32 %v1074_v54, %v1073_v42  ;;  %v1088_v7 = vrot.slane %v1087_v45, 2  ;;  %1384 = vmatpush.bf16.msrb.mxu2 %v1808_v24  ;;  %v1069_v54 = vld [vmem:[#allocation7 + $0x4] ss:$8 sm:$0x3] }
 0x353   :  { %v1097_v51 = vadd.f32 %v1096_v48, %v1095_v44 }
 0x354   :  { %v1076_v52 = vrot.slane %v1075_v49, 1  ;;  %v1089_v53 = vadd.f32 %v1088_v7, %v1087_v45  ;;  %1397 = vmatpush.bf16.msrb.mxu3 %v1816_v25  ;;  %v1071_v7 = vld [vmem:[#allocation7 + $0x5] ss:$8 sm:$0x3] }
 0x355   :  { %v1099_v56 = vsel %vm245_vm1, %v1083_v50, %v1097_v51 }
 0x356   :  { %1136 = vmatmul.f32.vlgmr.msra.gmra.mxu3 %v1099_v56  ;;  %1176 = vmatmul.f32.vlgmr.msrb.gmra.mxu1 %v1099_v56  ;;  %v1090_v33 = vrot.slane %v1089_v53, 1  ;;  %v1077_v28 = vadd.f32 %v1076_v52, %v1075_v49 }
 0x358   :  { %v1091_v5 = vadd.f32 %v1090_v33, %v1089_v53 }
 0x35a   :  { %v1098_v32 = vsel %vm245_vm1, %v1077_v28, %v1091_v5 }
 0x35b   :  { %1116 = vmatmul.f32.vlgmr.msra.gmra.mxu2 %v1098_v32  ;;  %1156 = vmatmul.f32.vlgmr.msrb.gmra.mxu0 %v1098_v32 }
 0x3d3   :  { %v1177_v29 = vpop.f32.mrf.mxu1 }
 0x3d8   :  { %v1157_v58 = vpop.f32.mrf.mxu0 }
 0x3d9   :  { %v2499_v38 = vadd.f32 %v1177_v29, %v1157_v58  ;;  %v1137_v63 = vpop.f32.mrf.mxu3 }
 0x3db   :  { %v1181_v10 = vmul.f32 %v2499_v38, %v2499_v38 }
 0x3dd   :  { %v1185_v59 = vrot.slane %v1181_v10, 7 }
 0x3de   :  { %v1117_v55 = vpop.f32.mrf.mxu2 }
 0x3df   :  { %v1189_v1 = vsub.f32 %v2499_v38, %v1185_v59  ;;  %v2504_v3 = vadd.f32 %v1137_v63, %v1117_v55 }
 0x3e1   :  { %v1191_v34 = vmax.f32 %v1189_v1, 0.0  ;;  %v1180_v2 = vmul.f32 %v2504_v3, %v2504_v3 }
 0x3e3   :  { %v1193_v61 = vadd.f32 1e-05, %v1191_v34  ;;  %v1184_v36 = vrot.slane %v1180_v2, 7 }
 0x3e5   :  { %1844 = vrsqrt.f32 %v1193_v61  ;;  %v1188_v31 = vsub.f32 %v2504_v3, %v1184_v36  ;;  %vm1210_vm0 = vweird.f32 %v1193_v61 }
 0x3e7   :  { %v1190_v4 = vmax.f32 %v1188_v31, 0.0 }
 0x3e9   :  { %v1192_v6 = vadd.f32 1e-05, %v1190_v4 }
 0x3eb   :  { %v1845_v9 = vpop.eup %1844  ;;  %1846 = vrsqrt.f32 %v1192_v6  ;;  %vm1200_vm4 = vweird.f32 %v1192_v6 }
 0x3ec   :  { %v1205_v11 = vmul.f32 %v1845_v9, %v1193_v61  ;;  %vm1211_vm15 = vweird.f32 %v1845_v9 }
 0x3ed   :  { %vm1212_vm2 = vmor %vm1210_vm0, %vm1211_vm15 }
 0x3ee   :  { %v1206_v15 = vmul.f32 %v1845_v9, %v1205_v11 }
 0x3f0   :  { %v1207_v18 = vmul.f32 0.5, %v1206_v15 }
 0x3f1   :  { %v1847_v21 = vpop.eup %1846 }
 0x3f2   :  { %v1208_v22 = vsub.f32 1.5, %v1207_v18  ;;  %v1195_v23 = vmul.f32 %v1847_v21, %v1192_v6  ;;  %vm1201_vm3 = vweird.f32 %v1847_v21 }
 0x3f3   :  { %vm1202_vm5 = vmor %vm1200_vm4, %vm1201_vm3 }
 0x3f4   :  { %v1209_v27 = vmul.f32 %v1845_v9, %v1208_v22  ;;  %v1196_v40 = vmul.f32 %v1847_v21, %v1195_v23 }
 0x3f6   :  { %v1213_v41 = vsel %vm1212_vm2, %v1845_v9, %v1209_v27  ;;  %v1197_v42 = vmul.f32 0.5, %v1196_v40 }
 0x3f7   :  { %1217 = vst [vmem:[#allocation1 + $0x9] sm:$0xff] %v1213_v41 }
 0x3f8   :  { %v1198_v19 = vsub.f32 1.5, %v1197_v42 }
 0x3fa   :  { %v1199_v43 = vmul.f32 %v1847_v21, %v1198_v19 }
 0x3fc   :  { %v1203_v44 = vsel %vm1202_vm5, %v1847_v21, %v1199_v43 }
 0x3fd   :  { %1216 = vst [vmem:[#allocation1] sm:$0xff] %v1203_v44 }
 0x404   :  { %v1219_v45 = vld [vmem:[#allocation1 + $0x1] ss:$9 sm:$0xff] }
 0x405   :  { %v1221_v46 = vmul.f32 %v1219_v45, %v1069_v54 }
 0x407   :  { %v1223_v47 = vperm.slane %v1221_v46, 0  ;;  %v1224_v48 = vperm.slane %v1221_v46, 1 }
 0x409   :  { %v1228_v49 = vmul.f32 %v1224_v48, %v2499_v38  ;;  %v1227_v50 = vmul.f32 %v1223_v47, %v2504_v3  ;;  %v1235_v56 = vmul.f32 %v1223_v47, %v2491_v20  ;;  %v1236_v28 = vmul.f32 %v1224_v48, %v2485_v12  ;;  %v1280_v38 = vld [vmem:[#allocation7 + $0x6] ss:$0 sm:$0xff] }
 0x40b   :  { %v1231_v51 = vrot.slane %v1228_v49, 7 }
 0x40d   :  { %v1232_v52 = vsel %vm245_vm1, %v1227_v50, %v1231_v51 }
 0x40e   :  { %v1234_v53 = vsub.f32 %v1071_v7, %v1232_v52 }
 0x410   :  { %v1238_v33 = vperm.slane %v1234_v53, 0  ;;  %v1239_v5 = vperm.slane %v1234_v53, 1 }
 0x412   :  { %v1242_v32 = vadd.f32 %v1238_v33, %v1235_v56  ;;  %v1243_v29 = vadd.f32 %v1239_v5, %v1236_v28 }
 0x414   :  { %v1244_v58 = vmax.f32 %v1242_v32, 0.0  ;;  %v1245_v60 = vmax.f32 %v1243_v29, 0.0 }
 0x416   :  { %v1246_v26 = vpack.c.bf16 %v1244_v58, %v1244_v58  ;;  %v1247_v10 = vpack.c.bf16 %v1245_v60, %v1245_v60 }
 0x418   :  { %1385 = vmatmul.bf16.vlgmr.msrb.gmra.mxu2 %v1246_v26  ;;  %1398 = vmatmul.bf16.vlgmr.msrb.gmra.mxu3 %v1247_v10 }
 0x49b   :  { %v1386_v30 = vpop.f32.mrf.mxu2  ;;  %v1399_v37 = vpop.f32.mrf.mxu3 }
 0x49c   :  { %v1387_v59 = vadd.f32 %v1386_v30, %v1280_v38 }
 0x49e   :  { %v1400_v63 = vadd.f32 %v1399_v37, %v1387_v59 }
 0x4a0   :  { %1403 = vst [vmem:[%s2524_s7] sm:$0xff] %v1400_v63 }
 0x4a3   :  { %v1388_v20 = vpop.f32.mrf.mxu2  ;;  %v1401_v12 = vpop.f32.mrf.mxu3 }
 0x4a4   :  { %1408 = vsyncpa [#allocation3], 1 }
 0x4a5   :  { %1409 = vsyncpa [#allocation5], 1 }
 0x4a6   :  { %1410 = vsyncpa [#allocation8], 1 }

</bundles_post_ra>
